<compile_context>
chip_gen: v7x
topology: tpu7x:2x2x1
jax: 0.10.0
libtpu: 0.0.40
codegen_flags: <defaults>
</compile_context>

<pallas_src>
import functools

import jax
import jax.numpy as jnp
from jax.experimental import pallas as pl
from jax.experimental.pallas import tpu as pltpu


def _vit_block_kernel(x_ref, ln1g_ref, ln1b_ref,
                      wq_ref, bq_ref, wk_ref, bk_ref, wv_ref, bv_ref,
                      wproj_ref, bproj_ref, ln2g_ref, ln2b_ref,
                      w1_ref, b1_ref, w2_ref, b2_ref,
                      o_ref, *, n_heads, eps):
    f32 = jnp.float32
    bt, n_tok, dim = x_ref.shape            # batch items handled by this step
    head_dim = dim // n_heads
    g = bt * n_heads                        # combined (batch, head) batch axis
    scale = head_dim ** (-0.5)
    cdt = wq_ref.dtype                      # matmul operand dtype (f32 or bf16)

    x = x_ref[...].astype(f32).reshape(bt * n_tok, dim)      # (T, D), T = bt*N

    def layernorm(t, gamma_ref, beta_ref):
        mu = jnp.mean(t, axis=-1, keepdims=True)
        var = jnp.mean(jnp.square(t - mu), axis=-1, keepdims=True)
        return (t - mu) * jax.lax.rsqrt(var + eps) * gamma_ref[...] + beta_ref[...]

    # ---- LayerNorm 1 ----
    xn = layernorm(x, ln1g_ref, ln1b_ref)                     # (T, D) f32

    # ---- Multi-head self attention, batched over (batch x heads) ----
    # Head-major operands are built with broadcasts + leading-dim reshapes only:
    # no lane slicing of the fused qkv, no in-kernel transposes, no concatenates.
    def rep_tokens(t2):                     # (T, D) -> (g, N, D)
        t4 = jnp.broadcast_to(t2.reshape(bt, 1, n_tok, dim),
                              (bt, n_heads, n_tok, dim))
        return t4.reshape(g, n_tok, dim)

    def rep_param(t):                       # (H, a, b) -> (g, a, b)
        tb = jnp.broadcast_to(t[None], (bt,) + t.shape)
        return tb.reshape((g,) + t.shape[1:])

    def bmm(lhs, rhs, contract):            # batched matmul, f32 accumulation
        return jax.lax.dot_general(
            lhs.astype(cdt), rhs.astype(cdt),
            (contract, ((0,), (0,))), preferred_element_type=f32)

    xn_h = rep_tokens(xn)                                     # (g, N, D)
    q = bmm(xn_h, rep_param(wq_ref[...]), ((2,), (1,))) + rep_param(bq_ref[...])
    k = bmm(xn_h, rep_param(wk_ref[...]), ((2,), (1,))) + rep_param(bk_ref[...])
    v = bmm(xn_h, rep_param(wv_ref[...]), ((2,), (1,))) + rep_param(bv_ref[...])
    q = q * scale                                             # (g, N, hd)

    # scores: contract the head_dim axes directly -- no materialized k.T
    s = bmm(q, k, ((2,), (2,)))                               # (g, N, N) f32
    s = s - jnp.max(s, axis=-1, keepdims=True)
    p = jnp.exp(s)
    p = p * pl.reciprocal(jnp.sum(p, axis=-1, keepdims=True), approx=True)

    ctx = bmm(p, v, ((2,), (1,)))                             # (g, N, hd)

    # Head merge: per-head projection contributions summed over heads
    # (replaces the lane-axis concatenate + single (D, D) matmul).
    ph = bmm(ctx, rep_param(wproj_ref[...]), ((2,), (1,)))    # (g, N, D)
    ph = ph.reshape(bt, n_heads, n_tok, dim)
    attn = ph[:, 0]
    for h in range(1, n_heads):             # small static unrolled sum (VPU adds)
        attn = attn + ph[:, h]
    attn = attn.reshape(bt * n_tok, dim) + bproj_ref[...]

    x1 = x + attn                                             # residual 1

    # ---- LayerNorm 2 + MLP ----
    xn2 = layernorm(x1, ln2g_ref, ln2b_ref)
    h1 = jnp.dot(xn2.astype(cdt), w1_ref[...],
                 preferred_element_type=f32) + b1_ref[...]    # (T, hidden)
    # TODO(synk): PyTorch nn.GELU() defaults to the exact erf GELU; the tanh
    # approximation is used here (guaranteed Mosaic lowering), max abs
    # deviation ~3e-4 on the GELU output.
    h1 = jax.nn.gelu(h1, approximate=True)
    y = jnp.dot(h1.astype(cdt), w2_ref[...],
                preferred_element_type=f32) + b2_ref[...]     # (T, D)

    o_ref[...] = (x1 + y).reshape(bt, n_tok, dim).astype(o_ref.dtype)


def vit_block(x, params, *, n_heads, eps=1e-6, batch_block=None):
    """Fused ViT Block forward.  params is the dict from prepare_params().

    batch_block: batch items per grid step.  Default = B (single fat step).
    On v7x one would pick batch_block = B // (2 * n_cores) (or token-shard)
    so both TensorCores get grid steps.
    """
    B, N, D = x.shape
    assert D % n_heads == 0
    if batch_block is None:
        batch_block = B
    assert B % batch_block == 0
    n_steps = B // batch_block

    order = ["ln1g", "ln1b", "wq", "bq", "wk", "bk", "wv", "bv",
             "wproj", "bproj", "ln2g", "ln2b", "w1", "b1", "w2", "b2"]

    def const_spec(a):
        # Small parameters: every grid step sees the full array (block index 0).
        return pl.BlockSpec(a.shape, lambda i, _nd=a.ndim: (0,) * _nd)

    in_specs = [pl.BlockSpec((batch_block, N, D), lambda i: (i, 0, 0))]
    in_specs += [const_spec(params[name]) for name in order]

    kernel = functools.partial(_vit_block_kernel, n_heads=n_heads, eps=eps)

    return pl.pallas_call(
        kernel,
        out_shape=jax.ShapeDtypeStruct((B, N, D), x.dtype),
        grid=(n_steps,),
        in_specs=in_specs,
        out_specs=pl.BlockSpec((batch_block, N, D), lambda i: (i, 0, 0)),
        compiler_params=pltpu.CompilerParams(
            dimension_semantics=("parallel",),
            vmem_limit_bytes=64 * 1024 * 1024),
    )(x, *[params[name] for name in order])


def prepare_params(raw, *, n_heads, param_dtype=jnp.float32):
    """Convert PyTorch-layout parameters (nn.Linear weight = (out, in)) into the
    kernel layout.  q/k/v and proj weights are pre-split per head on the host so
    the kernel never lane-slices or concatenates along the lane axis.
    param_dtype=jnp.bfloat16 halves weight DMA/VMEM at production sizes."""
    d = raw["w_proj"].shape[0]
    hd = d // n_heads
    wq, wk, wv = (raw["w_qkv"][i * d:(i + 1) * d] for i in range(3))
    bq, bk, bv = (raw["b_qkv"][i * d:(i + 1) * d] for i in range(3))

    def per_head_in(w):                     # (D_out, D_in) -> (H, D_in, head_dim)
        return jnp.transpose(w.reshape(n_heads, hd, d), (0, 2, 1))

    p = {
        "ln1g": raw["ln1_g"].reshape(1, d), "ln1b": raw["ln1_b"].reshape(1, d),
        "wq": per_head_in(wq), "bq": bq.reshape(n_heads, 1, hd),
        "wk": per_head_in(wk), "bk": bk.reshape(n_heads, 1, hd),
        "wv": per_head_in(wv), "bv": bv.reshape(n_heads, 1, hd),
        "wproj": raw["w_proj"].T.reshape(n_heads, hd, d),
        "bproj": raw["b_proj"].reshape(1, d),
        "ln2g": raw["ln2_g"].reshape(1, d), "ln2b": raw["ln2_b"].reshape(1, d),
        "w1": raw["w_fc1"].T, "b1": raw["b_fc1"].reshape(1, -1),
        "w2": raw["w_fc2"].T, "b2": raw["b_fc2"].reshape(1, -1),
    }
    if param_dtype != jnp.float32:
        for key in ("wq", "wk", "wv", "wproj", "w1", "w2"):
            p[key] = p[key].astype(param_dtype)
    return p


def vit_block_reference(x, raw, *, n_heads, eps=1e-6):
    """Pure-JAX reference matching the PyTorch Block forward (eval mode)."""
    hp = jax.lax.Precision.HIGHEST
    b, n, d = x.shape
    hd = d // n_heads

    def ln(t, gamma, beta):
        mu = jnp.mean(t, axis=-1, keepdims=True)
        var = jnp.mean(jnp.square(t - mu), axis=-1, keepdims=True)
        return (t - mu) / jnp.sqrt(var + eps) * gamma + beta

    xn = ln(x, raw["ln1_g"], raw["ln1_b"])
    qkv = jnp.einsum("bnd,od->bno", xn, raw["w_qkv"], precision=hp) + raw["b_qkv"]
    qkv = qkv.reshape(b, n, 3, n_heads, hd).transpose(2, 0, 3, 1, 4)
    q, k, v = qkv[0], qkv[1], qkv[2]
    s = jnp.einsum("bhqe,bhke->bhqk", q, k, precision=hp) * (hd ** -0.5)
    p = jax.nn.softmax(s, axis=-1)
    ctx = jnp.einsum("bhqk,bhke->bhqe", p, v, precision=hp)
    ctx = ctx.transpose(0, 2, 1, 3).reshape(b, n, d)
    attn = jnp.einsum("bnd,od->bno", ctx, raw["w_proj"], precision=hp) + raw["b_proj"]
    x1 = x + attn
    xn2 = ln(x1, raw["ln2_g"], raw["ln2_b"])
    h = jnp.einsum("bnd,hd->bnh", xn2, raw["w_fc1"], precision=hp) + raw["b_fc1"]
    h = jax.nn.gelu(h, approximate=True)    # matches kernel GELU (see TODO there)
    y = jnp.einsum("bnh,oh->bno", h, raw["w_fc2"], precision=hp) + raw["b_fc2"]
    return x1 + y


if __name__ == "__main__":
    # Small shapes consistent with Block(dim=32, n_heads=4, mlp_ratio=4.0)
    B, N, D, H = 2, 8, 32, 4
    hidden = int(D * 4.0)

    key = jax.random.PRNGKey(0)
    ks = jax.random.split(key, 9)
    x = jax.random.normal(ks[0], (B, N, D), dtype=jnp.float32)

    raw = {
        # LayerNorm params use PyTorch defaults (weight=1, bias=0).
        "ln1_g": jnp.ones((D,), jnp.float32),
        "ln1_b": jnp.zeros((D,), jnp.float32),
        "w_qkv": jax.random.normal(ks[1], (3 * D, D), jnp.float32) * 0.02,
        "b_qkv": jax.random.normal(ks[2], (3 * D,), jnp.float32) * 0.02,
        "w_proj": jax.random.normal(ks[3], (D, D), jnp.float32) * 0.02,
        "b_proj": jax.random.normal(ks[4], (D,), jnp.float32) * 0.02,
        "ln2_g": jnp.ones((D,), jnp.float32),
        "ln2_b": jnp.zeros((D,), jnp.float32),
        "w_fc1": jax.random.normal(ks[5], (hidden, D), jnp.float32) * 0.02,
        "b_fc1": jax.random.normal(ks[6], (hidden,), jnp.float32) * 0.02,
        "w_fc2": jax.random.normal(ks[7], (D, hidden), jnp.float32) * 0.02,
        "b_fc2": jax.random.normal(ks[8], (D,), jnp.float32) * 0.02,
    }

    params = prepare_params(raw, n_heads=H)          # f32 (bf16 optional)
    out = vit_block(x, params, n_heads=H)
    jax.block_until_ready(out)

    assert out.shape == (B, N, D) and out.dtype == jnp.float32
    ref = vit_block_reference(x, raw, n_heads=H)
    assert bool(jnp.allclose(out, ref, atol=1e-2, rtol=1e-2)), \
        "kernel output does not match reference"
    print("KERNEL_OK")
</pallas_src>

<mosaic_0001>
module attributes {stable_mosaic.version = 11 : i64} {
  func.func @_vit_block_kernel(%arg0: i32, %arg1: memref<2x8x32xf32, #tpu.memory_space<vmem>>, %arg2: memref<1x32xf32, #tpu.memory_space<vmem>>, %arg3: memref<1x32xf32, #tpu.memory_space<vmem>>, %arg4: memref<4x32x8xf32, #tpu.memory_space<vmem>>, %arg5: memref<4x1x8xf32, #tpu.memory_space<vmem>>, %arg6: memref<4x32x8xf32, #tpu.memory_space<vmem>>, %arg7: memref<4x1x8xf32, #tpu.memory_space<vmem>>, %arg8: memref<4x32x8xf32, #tpu.memory_space<vmem>>, %arg9: memref<4x1x8xf32, #tpu.memory_space<vmem>>, %arg10: memref<4x8x32xf32, #tpu.memory_space<vmem>>, %arg11: memref<1x32xf32, #tpu.memory_space<vmem>>, %arg12: memref<1x32xf32, #tpu.memory_space<vmem>>, %arg13: memref<1x32xf32, #tpu.memory_space<vmem>>, %arg14: memref<32x128xf32, #tpu.memory_space<vmem>>, %arg15: memref<1x128xf32, #tpu.memory_space<vmem>>, %arg16: memref<128x32xf32, #tpu.memory_space<vmem>>, %arg17: memref<1x32xf32, #tpu.memory_space<vmem>>, %arg18: memref<2x8x32xf32, #tpu.memory_space<vmem>>) attributes {dimension_semantics = [#tpu.dimension_semantics<parallel>], iteration_bounds = array<i64: 1>, scalar_prefetch = 0 : i64, scratch_operands = 0 : i64, tpu.core_type = #tpu.core_type<tc>, window_params = [{transform_indices = @transform_0, window_bounds = array<i64: 2, 8, 32>}, {pipeline_mode = #tpu.pipeline_mode<synchronous>, transform_indices = @transform_1, window_bounds = array<i64: 1, 32>}, {pipeline_mode = #tpu.pipeline_mode<synchronous>, transform_indices = @transform_2, window_bounds = array<i64: 1, 32>}, {pipeline_mode = #tpu.pipeline_mode<synchronous>, transform_indices = @transform_3, window_bounds = array<i64: 4, 32, 8>}, {pipeline_mode = #tpu.pipeline_mode<synchronous>, transform_indices = @transform_4, window_bounds = array<i64: 4, 1, 8>}, {pipeline_mode = #tpu.pipeline_mode<synchronous>, transform_indices = @transform_5, window_bounds = array<i64: 4, 32, 8>}, {pipeline_mode = #tpu.pipeline_mode<synchronous>, transform_indices = @transform_6, window_bounds = array<i64: 4, 1, 8>}, {pipeline_mode = #tpu.pipeline_mode<synchronous>, transform_indices = @transform_7, window_bounds = array<i64: 4, 32, 8>}, {pipeline_mode = #tpu.pipeline_mode<synchronous>, transform_indices = @transform_8, window_bounds = array<i64: 4, 1, 8>}, {pipeline_mode = #tpu.pipeline_mode<synchronous>, transform_indices = @transform_9, window_bounds = array<i64: 4, 8, 32>}, {pipeline_mode = #tpu.pipeline_mode<synchronous>, transform_indices = @transform_10, window_bounds = array<i64: 1, 32>}, {pipeline_mode = #tpu.pipeline_mode<synchronous>, transform_indices = @transform_11, window_bounds = array<i64: 1, 32>}, {pipeline_mode = #tpu.pipeline_mode<synchronous>, transform_indices = @transform_12, window_bounds = array<i64: 1, 32>}, {pipeline_mode = #tpu.pipeline_mode<synchronous>, transform_indices = @transform_13, window_bounds = array<i64: 32, 128>}, {pipeline_mode = #tpu.pipeline_mode<synchronous>, transform_indices = @transform_14, window_bounds = array<i64: 1, 128>}, {pipeline_mode = #tpu.pipeline_mode<synchronous>, transform_indices = @transform_15, window_bounds = array<i64: 128, 32>}, {pipeline_mode = #tpu.pipeline_mode<synchronous>, transform_indices = @transform_16, window_bounds = array<i64: 1, 32>}, {transform_indices = @transform_17, window_bounds = array<i64: 2, 8, 32>}]} {
    %c0 = arith.constant 0 : index
    %c0_0 = arith.constant 0 : index
    %c0_1 = arith.constant 0 : index
    %0 = vector.load %arg1[%c0, %c0_0, %c0_1] : memref<2x8x32xf32, #tpu.memory_space<vmem>>, vector<2x8x32xf32>
    %1 = vector.shape_cast %0 : vector<2x8x32xf32> to vector<16x32xf32>
    %cst = arith.constant dense<0.000000e+00> : vector<16xf32>
    %2 = vector.multi_reduction <add>, %1, %cst [1] : vector<16x32xf32> to vector<16xf32>
    %3 = vector.shape_cast %2 : vector<16xf32> to vector<16x1xf32>
    %cst_2 = arith.constant 3.200000e+01 : f32
    %4 = vector.broadcast %cst_2 : f32 to vector<16x1xf32>
    %5 = arith.divf %3, %4 : vector<16x1xf32>
    %6 = vector.broadcast %5 : vector<16x1xf32> to vector<16x32xf32>
    %7 = arith.subf %1, %6 : vector<16x32xf32>
    %8 = arith.mulf %7, %7 : vector<16x32xf32>
    %cst_3 = arith.constant dense<0.000000e+00> : vector<16xf32>
    %9 = vector.multi_reduction <add>, %8, %cst_3 [1] : vector<16x32xf32> to vector<16xf32>
    %10 = vector.shape_cast %9 : vector<16xf32> to vector<16x1xf32>
    %cst_4 = arith.constant 3.200000e+01 : f32
    %11 = vector.broadcast %cst_4 : f32 to vector<16x1xf32>
    %12 = arith.divf %10, %11 : vector<16x1xf32>
    %13 = vector.broadcast %5 : vector<16x1xf32> to vector<16x32xf32>
    %14 = arith.subf %1, %13 : vector<16x32xf32>
    %cst_5 = arith.constant 9.99999997E-7 : f32
    %15 = vector.broadcast %cst_5 : f32 to vector<16x1xf32>
    %16 = arith.addf %12, %15 : vector<16x1xf32>
    %17 = math.rsqrt %16 : vector<16x1xf32>
    %18 = vector.broadcast %17 : vector<16x1xf32> to vector<16x32xf32>
    %19 = arith.mulf %14, %18 : vector<16x32xf32>
    %c0_6 = arith.constant 0 : index
    %c0_7 = arith.constant 0 : index
    %20 = vector.load %arg2[%c0_6, %c0_7] : memref<1x32xf32, #tpu.memory_space<vmem>>, vector<1x32xf32>
    %21 = vector.broadcast %20 : vector<1x32xf32> to vector<16x32xf32>
    %22 = arith.mulf %19, %21 : vector<16x32xf32>
    %c0_8 = arith.constant 0 : index
    %c0_9 = arith.constant 0 : index
    %23 = vector.load %arg3[%c0_8, %c0_9] : memref<1x32xf32, #tpu.memory_space<vmem>>, vector<1x32xf32>
    %24 = vector.broadcast %23 : vector<1x32xf32> to vector<16x32xf32>
    %25 = arith.addf %22, %24 : vector<16x32xf32>
    %26 = vector.shape_cast %25 : vector<16x32xf32> to vector<2x1x8x32xf32>
    %27 = vector.shape_cast %26 : vector<2x1x8x32xf32> to vector<2x1x8x32xf32>
    %28 = vector.broadcast %27 : vector<2x1x8x32xf32> to vector<2x4x8x32xf32>
    %29 = vector.shape_cast %28 : vector<2x4x8x32xf32> to vector<8x8x32xf32>
    %c0_10 = arith.constant 0 : index
    %c0_11 = arith.constant 0 : index
    %c0_12 = arith.constant 0 : index
    %30 = vector.load %arg4[%c0_10, %c0_11, %c0_12] : memref<4x32x8xf32, #tpu.memory_space<vmem>>, vector<4x32x8xf32>
    %31 = vector.shape_cast %30 : vector<4x32x8xf32> to vector<1x4x32x8xf32>
    %32 = vector.shape_cast %31 : vector<1x4x32x8xf32> to vector<1x4x32x8xf32>
    %33 = vector.broadcast %32 : vector<1x4x32x8xf32> to vector<2x4x32x8xf32>
    %34 = vector.shape_cast %33 : vector<2x4x32x8xf32> to vector<8x32x8xf32>
    %cst_13 = arith.constant dense<0.000000e+00> : vector<8x8x8xf32>
    %35 = tpu.matmul %29, %34, %cst_13 {dimension_numbers = #tpu.dot_dimension_numbers<[2], [1], [1], [2], [0, 0, 0, 1, 1, 2], [0], [0]>} : vector<8x8x32xf32>, vector<8x32x8xf32>, vector<8x8x8xf32> -> vector<8x8x8xf32>
    %c0_14 = arith.constant 0 : index
    %c0_15 = arith.constant 0 : index
    %c0_16 = arith.constant 0 : index
    %36 = vector.load %arg5[%c0_14, %c0_15, %c0_16] : memref<4x1x8xf32, #tpu.memory_space<vmem>>, vector<4x1x8xf32>
    %37 = vector.shape_cast %36 : vector<4x1x8xf32> to vector<1x4x1x8xf32>
    %38 = vector.shape_cast %37 : vector<1x4x1x8xf32> to vector<1x4x1x8xf32>
    %39 = vector.broadcast %38 : vector<1x4x1x8xf32> to vector<2x4x1x8xf32>
    %40 = vector.shape_cast %39 : vector<2x4x1x8xf32> to vector<8x1x8xf32>
    %41 = vector.broadcast %40 : vector<8x1x8xf32> to vector<8x8x8xf32>
    %42 = arith.addf %35, %41 : vector<8x8x8xf32>
    %c0_17 = arith.constant 0 : index
    %c0_18 = arith.constant 0 : index
    %c0_19 = arith.constant 0 : index
    %43 = vector.load %arg6[%c0_17, %c0_18, %c0_19] : memref<4x32x8xf32, #tpu.memory_space<vmem>>, vector<4x32x8xf32>
    %44 = vector.shape_cast %43 : vector<4x32x8xf32> to vector<1x4x32x8xf32>
    %45 = vector.shape_cast %44 : vector<1x4x32x8xf32> to vector<1x4x32x8xf32>
    %46 = vector.broadcast %45 : vector<1x4x32x8xf32> to vector<2x4x32x8xf32>
    %47 = vector.shape_cast %46 : vector<2x4x32x8xf32> to vector<8x32x8xf32>
    %cst_20 = arith.constant dense<0.000000e+00> : vector<8x8x8xf32>
    %48 = tpu.matmul %29, %47, %cst_20 {dimension_numbers = #tpu.dot_dimension_numbers<[2], [1], [1], [2], [0, 0, 0, 1, 1, 2], [0], [0]>} : vector<8x8x32xf32>, vector<8x32x8xf32>, vector<8x8x8xf32> -> vector<8x8x8xf32>
    %c0_21 = arith.constant 0 : index
    %c0_22 = arith.constant 0 : index
    %c0_23 = arith.constant 0 : index
    %49 = vector.load %arg7[%c0_21, %c0_22, %c0_23] : memref<4x1x8xf32, #tpu.memory_space<vmem>>, vector<4x1x8xf32>
    %50 = vector.shape_cast %49 : vector<4x1x8xf32> to vector<1x4x1x8xf32>
    %51 = vector.shape_cast %50 : vector<1x4x1x8xf32> to vector<1x4x1x8xf32>
    %52 = vector.broadcast %51 : vector<1x4x1x8xf32> to vector<2x4x1x8xf32>
    %53 = vector.shape_cast %52 : vector<2x4x1x8xf32> to vector<8x1x8xf32>
    %54 = vector.broadcast %53 : vector<8x1x8xf32> to vector<8x8x8xf32>
    %55 = arith.addf %48, %54 : vector<8x8x8xf32>
    %c0_24 = arith.constant 0 : index
    %c0_25 = arith.constant 0 : index
    %c0_26 = arith.constant 0 : index
    %56 = vector.load %arg8[%c0_24, %c0_25, %c0_26] : memref<4x32x8xf32, #tpu.memory_space<vmem>>, vector<4x32x8xf32>
    %57 = vector.shape_cast %56 : vector<4x32x8xf32> to vector<1x4x32x8xf32>
    %58 = vector.shape_cast %57 : vector<1x4x32x8xf32> to vector<1x4x32x8xf32>
    %59 = vector.broadcast %58 : vector<1x4x32x8xf32> to vector<2x4x32x8xf32>
    %60 = vector.shape_cast %59 : vector<2x4x32x8xf32> to vector<8x32x8xf32>
    %cst_27 = arith.constant dense<0.000000e+00> : vector<8x8x8xf32>
    %61 = tpu.matmul %29, %60, %cst_27 {dimension_numbers = #tpu.dot_dimension_numbers<[2], [1], [1], [2], [0, 0, 0, 1, 1, 2], [0], [0]>} : vector<8x8x32xf32>, vector<8x32x8xf32>, vector<8x8x8xf32> -> vector<8x8x8xf32>
    %c0_28 = arith.constant 0 : index
    %c0_29 = arith.constant 0 : index
    %c0_30 = arith.constant 0 : index
    %62 = vector.load %arg9[%c0_28, %c0_29, %c0_30] : memref<4x1x8xf32, #tpu.memory_space<vmem>>, vector<4x1x8xf32>
    %63 = vector.shape_cast %62 : vector<4x1x8xf32> to vector<1x4x1x8xf32>
    %64 = vector.shape_cast %63 : vector<1x4x1x8xf32> to vector<1x4x1x8xf32>
    %65 = vector.broadcast %64 : vector<1x4x1x8xf32> to vector<2x4x1x8xf32>
    %66 = vector.shape_cast %65 : vector<2x4x1x8xf32> to vector<8x1x8xf32>
    %67 = vector.broadcast %66 : vector<8x1x8xf32> to vector<8x8x8xf32>
    %68 = arith.addf %61, %67 : vector<8x8x8xf32>
    %cst_31 = arith.constant 0.353553385 : f32
    %69 = vector.broadcast %cst_31 : f32 to vector<8x8x8xf32>
    %70 = arith.mulf %42, %69 : vector<8x8x8xf32>
    %cst_32 = arith.constant dense<0.000000e+00> : vector<8x8x8xf32>
    %71 = tpu.matmul %70, %55, %cst_32 {dimension_numbers = #tpu.dot_dimension_numbers<[2], [2], [1], [1], [0, 0, 0, 1, 1, 1], [0], [0]>} : vector<8x8x8xf32>, vector<8x8x8xf32>, vector<8x8x8xf32> -> vector<8x8x8xf32>
    %cst_33 = arith.constant dense<0xFF800000> : vector<8x8xf32>
    %72 = vector.multi_reduction <maximumf>, %71, %cst_33 [2] : vector<8x8x8xf32> to vector<8x8xf32>
    %73 = vector.shape_cast %72 : vector<8x8xf32> to vector<8x8x1xf32>
    %74 = vector.broadcast %73 : vector<8x8x1xf32> to vector<8x8x8xf32>
    %75 = arith.subf %71, %74 : vector<8x8x8xf32>
    %76 = math.exp %75 : vector<8x8x8xf32>
    %cst_34 = arith.constant dense<0.000000e+00> : vector<8x8xf32>
    %77 = vector.multi_reduction <add>, %76, %cst_34 [2] : vector<8x8x8xf32> to vector<8x8xf32>
    %78 = vector.shape_cast %77 : vector<8x8xf32> to vector<8x8x1xf32>
    %79 = tpu.reciprocal %78 {approx = true} : vector<8x8x1xf32> -> vector<8x8x1xf32>
    %80 = vector.broadcast %79 : vector<8x8x1xf32> to vector<8x8x8xf32>
    %81 = arith.mulf %76, %80 : vector<8x8x8xf32>
    %cst_35 = arith.constant dense<0.000000e+00> : vector<8x8x8xf32>
    %82 = tpu.matmul %81, %68, %cst_35 {dimension_numbers = #tpu.dot_dimension_numbers<[2], [1], [1], [2], [0, 0, 0, 1, 1, 2], [0], [0]>} : vector<8x8x8xf32>, vector<8x8x8xf32>, vector<8x8x8xf32> -> vector<8x8x8xf32>
    %c0_36 = arith.constant 0 : index
    %c0_37 = arith.constant 0 : index
    %c0_38 = arith.constant 0 : index
    %83 = vector.load %arg10[%c0_36, %c0_37, %c0_38] : memref<4x8x32xf32, #tpu.memory_space<vmem>>, vector<4x8x32xf32>
    %84 = vector.shape_cast %83 : vector<4x8x32xf32> to vector<1x4x8x32xf32>
    %85 = vector.shape_cast %84 : vector<1x4x8x32xf32> to vector<1x4x8x32xf32>
    %86 = vector.broadcast %85 : vector<1x4x8x32xf32> to vector<2x4x8x32xf32>
    %87 = vector.shape_cast %86 : vector<2x4x8x32xf32> to vector<8x8x32xf32>
    %cst_39 = arith.constant dense<0.000000e+00> : vector<8x8x32xf32>
    %88 = tpu.matmul %82, %87, %cst_39 {dimension_numbers = #tpu.dot_dimension_numbers<[2], [1], [1], [2], [0, 0, 0, 1, 1, 2], [0], [0]>} : vector<8x8x8xf32>, vector<8x8x32xf32>, vector<8x8x32xf32> -> vector<8x8x32xf32>
    %89 = vector.shape_cast %88 : vector<8x8x32xf32> to vector<2x4x8x32xf32>
    %90 = vector.extract_strided_slice %89 {offsets = [0, 0, 0, 0], sizes = [2, 1, 8, 32], strides = [1, 1, 1, 1]} : vector<2x4x8x32xf32> to vector<2x1x8x32xf32>
    %91 = vector.shape_cast %90 : vector<2x1x8x32xf32> to vector<2x8x32xf32>
    %92 = vector.extract_strided_slice %89 {offsets = [0, 1, 0, 0], sizes = [2, 1, 8, 32], strides = [1, 1, 1, 1]} : vector<2x4x8x32xf32> to vector<2x1x8x32xf32>
    %93 = vector.shape_cast %92 : vector<2x1x8x32xf32> to vector<2x8x32xf32>
    %94 = arith.addf %91, %93 : vector<2x8x32xf32>
    %95 = vector.extract_strided_slice %89 {offsets = [0, 2, 0, 0], sizes = [2, 1, 8, 32], strides = [1, 1, 1, 1]} : vector<2x4x8x32xf32> to vector<2x1x8x32xf32>
    %96 = vector.shape_cast %95 : vector<2x1x8x32xf32> to vector<2x8x32xf32>
    %97 = arith.addf %94, %96 : vector<2x8x32xf32>
    %98 = vector.extract_strided_slice %89 {offsets = [0, 3, 0, 0], sizes = [2, 1, 8, 32], strides = [1, 1, 1, 1]} : vector<2x4x8x32xf32> to vector<2x1x8x32xf32>
    %99 = vector.shape_cast %98 : vector<2x1x8x32xf32> to vector<2x8x32xf32>
    %100 = arith.addf %97, %99 : vector<2x8x32xf32>
    %101 = vector.shape_cast %100 : vector<2x8x32xf32> to vector<16x32xf32>
    %c0_40 = arith.constant 0 : index
    %c0_41 = arith.constant 0 : index
    %102 = vector.load %arg11[%c0_40, %c0_41] : memref<1x32xf32, #tpu.memory_space<vmem>>, vector<1x32xf32>
    %103 = vector.broadcast %102 : vector<1x32xf32> to vector<16x32xf32>
    %104 = arith.addf %101, %103 : vector<16x32xf32>
    %105 = arith.addf %1, %104 : vector<16x32xf32>
    %cst_42 = arith.constant dense<0.000000e+00> : vector<16xf32>
    %106 = vector.multi_reduction <add>, %105, %cst_42 [1] : vector<16x32xf32> to vector<16xf32>
    %107 = vector.shape_cast %106 : vector<16xf32> to vector<16x1xf32>
    %cst_43 = arith.constant 3.200000e+01 : f32
    %108 = vector.broadcast %cst_43 : f32 to vector<16x1xf32>
    %109 = arith.divf %107, %108 : vector<16x1xf32>
    %110 = vector.broadcast %109 : vector<16x1xf32> to vector<16x32xf32>
    %111 = arith.subf %105, %110 : vector<16x32xf32>
    %112 = arith.mulf %111, %111 : vector<16x32xf32>
    %cst_44 = arith.constant dense<0.000000e+00> : vector<16xf32>
    %113 = vector.multi_reduction <add>, %112, %cst_44 [1] : vector<16x32xf32> to vector<16xf32>
    %114 = vector.shape_cast %113 : vector<16xf32> to vector<16x1xf32>
    %cst_45 = arith.constant 3.200000e+01 : f32
    %115 = vector.broadcast %cst_45 : f32 to vector<16x1xf32>
    %116 = arith.divf %114, %115 : vector<16x1xf32>
    %117 = vector.broadcast %109 : vector<16x1xf32> to vector<16x32xf32>
    %118 = arith.subf %105, %117 : vector<16x32xf32>
    %cst_46 = arith.constant 9.99999997E-7 : f32
    %119 = vector.broadcast %cst_46 : f32 to vector<16x1xf32>
    %120 = arith.addf %116, %119 : vector<16x1xf32>
    %121 = math.rsqrt %120 : vector<16x1xf32>
    %122 = vector.broadcast %121 : vector<16x1xf32> to vector<16x32xf32>
    %123 = arith.mulf %118, %122 : vector<16x32xf32>
    %c0_47 = arith.constant 0 : index
    %c0_48 = arith.constant 0 : index
    %124 = vector.load %arg12[%c0_47, %c0_48] : memref<1x32xf32, #tpu.memory_space<vmem>>, vector<1x32xf32>
    %125 = vector.broadcast %124 : vector<1x32xf32> to vector<16x32xf32>
    %126 = arith.mulf %123, %125 : vector<16x32xf32>
    %c0_49 = arith.constant 0 : index
    %c0_50 = arith.constant 0 : index
    %127 = vector.load %arg13[%c0_49, %c0_50] : memref<1x32xf32, #tpu.memory_space<vmem>>, vector<1x32xf32>
    %128 = vector.broadcast %127 : vector<1x32xf32> to vector<16x32xf32>
    %129 = arith.addf %126, %128 : vector<16x32xf32>
    %c0_51 = arith.constant 0 : index
    %c0_52 = arith.constant 0 : index
    %130 = vector.load %arg14[%c0_51, %c0_52] : memref<32x128xf32, #tpu.memory_space<vmem>>, vector<32x128xf32>
    %cst_53 = arith.constant dense<0.000000e+00> : vector<16x128xf32>
    %131 = tpu.matmul %129, %130, %cst_53 {dimension_numbers = #tpu.dot_dimension_numbers<[1], [0], [0], [1], [0, 0, 1, 1], [], []>} : vector<16x32xf32>, vector<32x128xf32>, vector<16x128xf32> -> vector<16x128xf32>
    %c0_54 = arith.constant 0 : index
    %c0_55 = arith.constant 0 : index
    %132 = vector.load %arg15[%c0_54, %c0_55] : memref<1x128xf32, #tpu.memory_space<vmem>>, vector<1x128xf32>
    %133 = vector.broadcast %132 : vector<1x128xf32> to vector<16x128xf32>
    %134 = arith.addf %131, %133 : vector<16x128xf32>
    %135 = arith.mulf %134, %134 : vector<16x128xf32>
    %136 = arith.mulf %134, %135 : vector<16x128xf32>
    %cst_56 = arith.constant 4.471500e-02 : f32
    %137 = vector.broadcast %cst_56 : f32 to vector<16x128xf32>
    %138 = arith.mulf %137, %136 : vector<16x128xf32>
    %139 = arith.addf %134, %138 : vector<16x128xf32>
    %cst_57 = arith.constant 0.797884583 : f32
    %140 = vector.broadcast %cst_57 : f32 to vector<16x128xf32>
    %141 = arith.mulf %140, %139 : vector<16x128xf32>
    %142 = math.tanh %141 : vector<16x128xf32>
    %cst_58 = arith.constant 1.000000e+00 : f32
    %143 = vector.broadcast %cst_58 : f32 to vector<16x128xf32>
    %144 = arith.addf %143, %142 : vector<16x128xf32>
    %cst_59 = arith.constant 5.000000e-01 : f32
    %145 = vector.broadcast %cst_59 : f32 to vector<16x128xf32>
    %146 = arith.mulf %145, %144 : vector<16x128xf32>
    %147 = arith.mulf %134, %146 : vector<16x128xf32>
    %c0_60 = arith.constant 0 : index
    %c0_61 = arith.constant 0 : index
    %148 = vector.load %arg16[%c0_60, %c0_61] : memref<128x32xf32, #tpu.memory_space<vmem>>, vector<128x32xf32>
    %cst_62 = arith.constant dense<0.000000e+00> : vector<16x32xf32>
    %149 = tpu.matmul %147, %148, %cst_62 {dimension_numbers = #tpu.dot_dimension_numbers<[1], [0], [0], [1], [0, 0, 1, 1], [], []>} : vector<16x128xf32>, vector<128x32xf32>, vector<16x32xf32> -> vector<16x32xf32>
    %c0_63 = arith.constant 0 : index
    %c0_64 = arith.constant 0 : index
    %150 = vector.load %arg17[%c0_63, %c0_64] : memref<1x32xf32, #tpu.memory_space<vmem>>, vector<1x32xf32>
    %151 = vector.broadcast %150 : vector<1x32xf32> to vector<16x32xf32>
    %152 = arith.addf %149, %151 : vector<16x32xf32>
    %153 = arith.addf %105, %152 : vector<16x32xf32>
    %154 = vector.shape_cast %153 : vector<16x32xf32> to vector<2x8x32xf32>
    %c0_65 = arith.constant 0 : index
    %c0_66 = arith.constant 0 : index
    %c0_67 = arith.constant 0 : index
    %155 = vector.load %arg18[%c0_65, %c0_66, %c0_67] : memref<2x8x32xf32, #tpu.memory_space<vmem>>, vector<2x8x32xf32>
    tpu.vector_store %arg18[%c0_65, %c0_66, %c0_67], %154 {strides = array<i32>} : memref<2x8x32xf32, #tpu.memory_space<vmem>>, vector<2x8x32xf32>,
    return
  }
  func.func @transform_0(%arg0: i32) -> (i32, i32, i32) {
    %c0_i32 = arith.constant 0 : i32
    %c0_i32_0 = arith.constant 0 : i32
    %c0_i32_1 = arith.constant 0 : i32
    return %arg0, %c0_i32, %c0_i32_0 : i32, i32, i32
  }
  func.func @transform_1(%arg0: i32) -> (i32, i32) {
    %c0_i32 = arith.constant 0 : i32
    %c0_i32_0 = arith.constant 0 : i32
    %c0_i32_1 = arith.constant 0 : i32
    return %c0_i32, %c0_i32_0 : i32, i32
  }
  func.func @transform_2(%arg0: i32) -> (i32, i32) {
    %c0_i32 = arith.constant 0 : i32
    %c0_i32_0 = arith.constant 0 : i32
    %c0_i32_1 = arith.constant 0 : i32
    return %c0_i32, %c0_i32_0 : i32, i32
  }
  func.func @transform_3(%arg0: i32) -> (i32, i32, i32) {
    %c0_i32 = arith.constant 0 : i32
    %c0_i32_0 = arith.constant 0 : i32
    %c0_i32_1 = arith.constant 0 : i32
    %c0_i32_2 = arith.constant 0 : i32
    return %c0_i32, %c0_i32_0, %c0_i32_1 : i32, i32, i32
  }
  func.func @transform_4(%arg0: i32) -> (i32, i32, i32) {
    %c0_i32 = arith.constant 0 : i32
    %c0_i32_0 = arith.constant 0 : i32
    %c0_i32_1 = arith.constant 0 : i32
    %c0_i32_2 = arith.constant 0 : i32
    return %c0_i32, %c0_i32_0, %c0_i32_1 : i32, i32, i32
  }
  func.func @transform_5(%arg0: i32) -> (i32, i32, i32) {
    %c0_i32 = arith.constant 0 : i32
    %c0_i32_0 = arith.constant 0 : i32
    %c0_i32_1 = arith.constant 0 : i32
    %c0_i32_2 = arith.constant 0 : i32
    return %c0_i32, %c0_i32_0, %c0_i32_1 : i32, i32, i32
  }
  func.func @transform_6(%arg0: i32) -> (i32, i32, i32) {
    %c0_i32 = arith.constant 0 : i32
    %c0_i32_0 = arith.constant 0 : i32
    %c0_i32_1 = arith.constant 0 : i32
    %c0_i32_2 = arith.constant 0 : i32
    return %c0_i32, %c0_i32_0, %c0_i32_1 : i32, i32, i32
  }
  func.func @transform_7(%arg0: i32) -> (i32, i32, i32) {
    %c0_i32 = arith.constant 0 : i32
    %c0_i32_0 = arith.constant 0 : i32
    %c0_i32_1 = arith.constant 0 : i32
    %c0_i32_2 = arith.constant 0 : i32
    return %c0_i32, %c0_i32_0, %c0_i32_1 : i32, i32, i32
  }
  func.func @transform_8(%arg0: i32) -> (i32, i32, i32) {
    %c0_i32 = arith.constant 0 : i32
    %c0_i32_0 = arith.constant 0 : i32
    %c0_i32_1 = arith.constant 0 : i32
    %c0_i32_2 = arith.constant 0 : i32
    return %c0_i32, %c0_i32_0, %c0_i32_1 : i32, i32, i32
  }
  func.func @transform_9(%arg0: i32) -> (i32, i32, i32) {
    %c0_i32 = arith.constant 0 : i32
    %c0_i32_0 = arith.constant 0 : i32
    %c0_i32_1 = arith.constant 0 : i32
    %c0_i32_2 = arith.constant 0 : i32
    return %c0_i32, %c0_i32_0, %c0_i32_1 : i32, i32, i32
  }
  func.func @transform_10(%arg0: i32) -> (i32, i32) {
    %c0_i32 = arith.constant 0 : i32
    %c0_i32_0 = arith.constant 0 : i32
    %c0_i32_1 = arith.constant 0 : i32
    return %c0_i32, %c0_i32_0 : i32, i32
  }
  func.func @transform_11(%arg0: i32) -> (i32, i32) {
    %c0_i32 = arith.constant 0 : i32
    %c0_i32_0 = arith.constant 0 : i32
    %c0_i32_1 = arith.constant 0 : i32
    return %c0_i32, %c0_i32_0 : i32, i32
  }
  func.func @transform_12(%arg0: i32) -> (i32, i32) {
    %c0_i32 = arith.constant 0 : i32
    %c0_i32_0 = arith.constant 0 : i32
    %c0_i32_1 = arith.constant 0 : i32
    return %c0_i32, %c0_i32_0 : i32, i32
  }
  func.func @transform_13(%arg0: i32) -> (i32, i32) {
    %c0_i32 = arith.constant 0 : i32
    %c0_i32_0 = arith.constant 0 : i32
    %c0_i32_1 = arith.constant 0 : i32
    return %c0_i32, %c0_i32_0 : i32, i32
  }
  func.func @transform_14(%arg0: i32) -> (i32, i32) {
    %c0_i32 = arith.constant 0 : i32
    %c0_i32_0 = arith.constant 0 : i32
    %c0_i32_1 = arith.constant 0 : i32
    return %c0_i32, %c0_i32_0 : i32, i32
  }
  func.func @transform_15(%arg0: i32) -> (i32, i32) {
    %c0_i32 = arith.constant 0 : i32
    %c0_i32_0 = arith.constant 0 : i32
    %c0_i32_1 = arith.constant 0 : i32
    return %c0_i32, %c0_i32_0 : i32, i32
  }
  func.func @transform_16(%arg0: i32) -> (i32, i32) {
    %c0_i32 = arith.constant 0 : i32
    %c0_i32_0 = arith.constant 0 : i32
    %c0_i32_1 = arith.constant 0 : i32
    return %c0_i32, %c0_i32_0 : i32, i32
  }
  func.func @transform_17(%arg0: i32) -> (i32, i32, i32) {
    %c0_i32 = arith.constant 0 : i32
    %c0_i32_0 = arith.constant 0 : i32
    %c0_i32_1 = arith.constant 0 : i32
    return %arg0, %c0_i32, %c0_i32_0 : i32, i32, i32
  }
}

</mosaic_0001>

<bundles_post_ra>
// kernel: tpu_custom_call.1
= control target key start
LH: loop header
LB: loop body
LE: loop exit
PB: predicated region body
PF: predicated region fallthrough
CT: control target
= control target key end

     0   :  { %s6374_s0 = inlined_call_operand.hbm [shape: f32[2,8,32], index: 0, kind: input, shape index: {}]   ;;  %s6375_s1 = inlined_call_operand.hbm [shape: f32[1,32], index: 1, kind: input, shape index: {}]   ;;  %s6376_s2 = inlined_call_operand.hbm [shape: f32[1,32], index: 2, kind: input, shape index: {}]   ;;  %s6377_s3 = inlined_call_operand.hbm [shape: f32[4,32,8], index: 3, kind: input, shape index: {}]   ;;  %s6378_s4 = inlined_call_operand.hbm [shape: f32[4,1,8], index: 4, kind: input, shape index: {}]   ;;  %s6379_s5 = inlined_call_operand.hbm [shape: f32[4,32,8], index: 5, kind: input, shape index: {}]   ;;  %s6380_s6 = inlined_call_operand.hbm [shape: f32[4,1,8], index: 6, kind: input, shape index: {}]   ;;  %s6381_s7 = inlined_call_operand.hbm [shape: f32[4,32,8], index: 7, kind: input, shape index: {}]   ;;  %s6382_s8 = inlined_call_operand.hbm [shape: f32[4,1,8], index: 8, kind: input, shape index: {}]   ;;  %s6383_s9 = inlined_call_operand.hbm [shape: f32[4,8,32], index: 9, kind: input, shape index: {}]   ;;  %s6384_s10 = inlined_call_operand.hbm [shape: f32[1,32], index: 10, kind: input, shape index: {}]   ;;  %s6385_s11 = inlined_call_operand.hbm [shape: f32[1,32], index: 11, kind: input, shape index: {}]   ;;  %s6386_s12 = inlined_call_operand.hbm [shape: f32[1,32], index: 12, kind: input, shape index: {}]   ;;  %s6387_s13 = inlined_call_operand.hbm [shape: f32[32,128], index: 13, kind: input, shape index: {}]   ;;  %s6388_s14 = inlined_call_operand.hbm [shape: f32[1,128], index: 14, kind: input, shape index: {}]   ;;  %s6389_s15 = inlined_call_operand.hbm [shape: f32[128,32], index: 15, kind: input, shape index: {}]   ;;  %s6390_s16 = inlined_call_operand.hbm [shape: f32[1,32], index: 16, kind: input, shape index: {}]   ;;  %s6391_s17 = inlined_call_operand.hbm [shape: f32[2,8,32], index: 17, kind: output, shape index: {}]  }
   0x1   :  { %6394 = sst [smem:[#allocation40_spill]] %s6374_s0 }
   0x2   :  { %6395 = sst [smem:[#allocation41_spill]] %s6375_s1 }
   0x3   :  { %22 = vsyncpa [#allocation3], 0 }
   0x4   :  { %23 = vsyncpa [#allocation6], 0 }
   0x5   :  { %24 = vsyncpa [#allocation9], 0 }
   0x6   :  { %25 = vsyncpa [#allocation12], 0 }
   0x7   :  { %26 = vsyncpa [#allocation15], 0 }
   0x8   :  { %27 = vsyncpa [#allocation18], 0 }
   0x9   :  { %28 = vsyncpa [#allocation21], 0 }
   0xa   :  { %29 = vsyncpa [#allocation24], 0 }
   0xb   :  { %30 = vsyncpa [#allocation27], 0 }
   0xc   :  { %31 = vsyncpa [#allocation4], 0  ;;  %s5684_s24 = smov [#allocation5]   ;;  %s6396_s28 = sld [smem:[#allocation41_spill]] }
   0xd   :  { %s50_s25 = sshll.u32 %s5684_s24, 4  ;;  %s51_s25 = int_to_ptr.vmem [resolvable:$true] %s50_s25 }
  0x12   :  { %s5268_s29 = scalar_lea.hbm %s6396_s28, 16 }
  0x13   :  { %p5269_p0 = scmp.ne.s32.totalorder %s6396_s28, %s5268_s29  ;;  %p5272_p1 = scmp.lt.u32.totalorder %s5268_s29, %s6396_s28 }
  0x15   :  { %p5274_p2 = pnand %p5272_p1, %p5269_p0 }
  0x17   :  { %5277 = shalt.err (!%p5274_p2)
}
  0x18   :  { %s5278_s1 = scalar_lea.vmem %s51_s25, 16  ;;  %s5282_s20 = scalar_lea.vmem %s51_s25, 32 }
  0x19   :  { %p5279_p3 = scmp.ne.s32.totalorder %s51_s25, %s5278_s1  ;;  %p5283_p4 = scmp.lt.s32.totalorder %s51_s25, %s51_s25 }
  0x1a   :  { %p5284_p5 = scmp.lt.s32.totalorder %s5282_s20, %s5278_s1 }
  0x1c   :  { %p5285_p6 = por %p5284_p5, %p5283_p4 }
  0x1e   :  { %p5286_p7 = pnand %p5285_p6, %p5279_p3 }
  0x20   :  { %5289 = shalt.err (!%p5286_p7)
}
  0x21   :  { %53 = dma.hbm_to_vmem [thread:$0]  %s6396_s28, 16, %s51_s25, [#allocation6]  }
  0x22   :  { %s5685_s23 = smov [#allocation8]   ;;  %s5686_s26 = smov [#allocation11]  }
  0x23   :  { %s69_s24 = sshll.u32 %s5685_s23, 4  ;;  %s93_s27 = sshll.u32 %s5686_s26, 4  ;;  %s70_s24 = int_to_ptr.vmem [resolvable:$true] %s69_s24  ;;  %s94_s27 = int_to_ptr.vmem [resolvable:$true] %s93_s27 }
  0x24   :  { %s5290_s30 = scalar_lea.hbm %s6377_s3, 2048 }
  0x25   :  { %p5291_p8 = scmp.ne.s32.totalorder %s6377_s3, %s5290_s30  ;;  %p5294_p9 = scmp.lt.u32.totalorder %s5290_s30, %s6377_s3 }
  0x27   :  { %p5296_p10 = pnand %p5294_p9, %p5291_p8 }
  0x29   :  { %5299 = shalt.err (!%p5296_p10)
}
  0x2a   :  { %s5300_s25 = scalar_lea.vmem %s70_s24, 2048  ;;  %p5305_p12 = scmp.lt.s32.totalorder %s70_s24, %s70_s24 }
  0x2b   :  { %p5301_p11 = scmp.ne.s32.totalorder %s70_s24, %s5300_s25  ;;  %p5306_p13 = scmp.lt.s32.totalorder %s5300_s25, %s5300_s25 }
  0x2d   :  { %p5307_p0 = por %p5306_p13, %p5305_p12 }
  0x2f   :  { %p5308_p1 = pnand %p5307_p0, %p5301_p11 }
  0x31   :  { %5311 = shalt.err (!%p5308_p1)
}
  0x32   :  { %s5687_s28 = smov 128   ;;  %s5688_s21 = smov 8  }
  0x33   :  { %75 = dma.hbm_to_vmem [thread:$0]  %s6377_s3, 2048, %s70_s24, [#allocation9], %s5687_s28, %s5687_s28, %s5688_s21  }
  0x34   :  { %s5312_s0 = scalar_lea.hbm %s6379_s5, 2048 }
  0x35   :  { %p5313_p2 = scmp.ne.s32.totalorder %s6379_s5, %s5312_s0  ;;  %p5316_p3 = scmp.lt.u32.totalorder %s5312_s0, %s6379_s5 }
  0x37   :  { %p5318_p4 = pnand %p5316_p3, %p5313_p2 }
  0x39   :  { %5321 = shalt.err (!%p5318_p4)
}
  0x3a   :  { %s5322_s20 = scalar_lea.vmem %s94_s27, 2048  ;;  %p5327_p6 = scmp.lt.s32.totalorder %s94_s27, %s94_s27 }
  0x3b   :  { %p5323_p5 = scmp.ne.s32.totalorder %s94_s27, %s5322_s20  ;;  %p5328_p7 = scmp.lt.s32.totalorder %s5322_s20, %s5322_s20 }
  0x3d   :  { %p5329_p8 = por %p5328_p7, %p5327_p6 }
  0x3f   :  { %p5330_p9 = pnand %p5329_p8, %p5323_p5 }
  0x41   :  { %5333 = shalt.err (!%p5330_p9)
}
  0x42   :  { %99 = dma.hbm_to_vmem [thread:$0]  %s6379_s5, 2048, %s94_s27, [#allocation12], %s5687_s28, %s5687_s28, %s5688_s21  }
  0x43   :  { %s5689_s25 = smov [#allocation14]   ;;  %s5690_s23 = smov [#allocation17]  }
  0x44   :  { %s117_s22 = sshll.u32 %s5689_s25, 4  ;;  %s141_s26 = sshll.u32 %s5690_s23, 4  ;;  %s118_s22 = int_to_ptr.vmem [resolvable:$true] %s117_s22  ;;  %s142_s26 = int_to_ptr.vmem [resolvable:$true] %s141_s26 }
  0x45   :  { %s5334_s30 = scalar_lea.hbm %s6381_s7, 2048 }
  0x46   :  { %p5335_p10 = scmp.ne.s32.totalorder %s6381_s7, %s5334_s30  ;;  %p5338_p11 = scmp.lt.u32.totalorder %s5334_s30, %s6381_s7 }
  0x48   :  { %p5340_p12 = pnand %p5338_p11, %p5335_p10 }
  0x4a   :  { %5343 = shalt.err (!%p5340_p12)
}
  0x4b   :  { %s5344_s5 = scalar_lea.vmem %s118_s22, 2048  ;;  %p5349_p0 = scmp.lt.s32.totalorder %s118_s22, %s118_s22 }
  0x4c   :  { %p5345_p13 = scmp.ne.s32.totalorder %s118_s22, %s5344_s5  ;;  %p5350_p1 = scmp.lt.s32.totalorder %s5344_s5, %s5344_s5 }
  0x4e   :  { %p5351_p2 = por %p5350_p1, %p5349_p0 }
  0x50   :  { %p5352_p3 = pnand %p5351_p2, %p5345_p13 }
  0x52   :  { %5355 = shalt.err (!%p5352_p3)
}
  0x53   :  { %123 = dma.hbm_to_vmem [thread:$0]  %s6381_s7, 2048, %s118_s22, [#allocation15], %s5687_s28, %s5687_s28, %s5688_s21  }
  0x54   :  { %s5356_s23 = scalar_lea.hbm %s6383_s9, 512 }
  0x55   :  { %p5357_p4 = scmp.ne.s32.totalorder %s6383_s9, %s5356_s23  ;;  %p5360_p5 = scmp.lt.u32.totalorder %s5356_s23, %s6383_s9 }
  0x57   :  { %p5362_p6 = pnand %p5360_p5, %p5357_p4 }
  0x59   :  { %5365 = shalt.err (!%p5362_p6)
}
  0x5a   :  { %s5366_s19 = scalar_lea.vmem %s142_s26, 512  ;;  %p5371_p8 = scmp.lt.s32.totalorder %s142_s26, %s142_s26 }
  0x5b   :  { %p5367_p7 = scmp.ne.s32.totalorder %s142_s26, %s5366_s19  ;;  %p5372_p9 = scmp.lt.s32.totalorder %s5366_s19, %s5366_s19 }
  0x5d   :  { %p5373_p10 = por %p5372_p9, %p5371_p8 }
  0x5f   :  { %p5374_p11 = pnand %p5373_p10, %p5367_p7 }
  0x61   :  { %5377 = shalt.err (!%p5374_p11)
}
  0x62   :  { %147 = dma.hbm_to_vmem [thread:$0]  %s6383_s9, 512, %s142_s26, [#allocation18], %s5687_s28, %s5687_s28, %s5688_s21  }
  0x63   :  { %s5691_s1 = smov [#allocation20]   ;;  %s5692_s5 = smov [#allocation23]  }
  0x64   :  { %s164_s20 = sshll.u32 %s5691_s1, 4  ;;  %s183_s27 = sshll.u32 %s5692_s5, 4  ;;  %s165_s20 = int_to_ptr.vmem [resolvable:$true] %s164_s20  ;;  %s184_s27 = int_to_ptr.vmem [resolvable:$true] %s183_s27 }
  0x65   :  { %s5378_s25 = scalar_lea.hbm %s6385_s11, 16 }
  0x66   :  { %p5379_p12 = scmp.ne.s32.totalorder %s6385_s11, %s5378_s25  ;;  %p5382_p13 = scmp.lt.u32.totalorder %s5378_s25, %s6385_s11 }
  0x68   :  { %p5384_p0 = pnand %p5382_p13, %p5379_p12 }
  0x6a   :  { %5387 = shalt.err (!%p5384_p0)
}
  0x6b   :  { %s5388_s9 = scalar_lea.vmem %s165_s20, 16  ;;  %s5392_s26 = scalar_lea.vmem %s165_s20, 32 }
  0x6c   :  { %p5389_p1 = scmp.ne.s32.totalorder %s165_s20, %s5388_s9  ;;  %p5393_p2 = scmp.lt.s32.totalorder %s165_s20, %s165_s20 }
  0x6d   :  { %p5394_p3 = scmp.lt.s32.totalorder %s5392_s26, %s5388_s9 }
  0x6f   :  { %p5395_p4 = por %p5394_p3, %p5393_p2 }
  0x71   :  { %p5396_p5 = pnand %p5395_p4, %p5389_p1 }
  0x73   :  { %5399 = shalt.err (!%p5396_p5)
}
  0x74   :  { %167 = dma.hbm_to_vmem [thread:$0]  %s6385_s11, 16, %s165_s20, [#allocation21]  }
  0x75   :  { %s5400_s1 = scalar_lea.hbm %s6387_s13, 512 }
  0x76   :  { %p5401_p6 = scmp.ne.s32.totalorder %s6387_s13, %s5400_s1  ;;  %p5404_p7 = scmp.lt.u32.totalorder %s5400_s1, %s6387_s13 }
  0x78   :  { %p5406_p8 = pnand %p5404_p7, %p5401_p6 }
  0x7a   :  { %5409 = shalt.err (!%p5406_p8)
}
  0x7b   :  { %s5410_s23 = scalar_lea.vmem %s184_s27, 512  ;;  %p5415_p10 = scmp.lt.s32.totalorder %s184_s27, %s184_s27 }
  0x7c   :  { %p5411_p9 = scmp.ne.s32.totalorder %s184_s27, %s5410_s23  ;;  %p5416_p11 = scmp.lt.s32.totalorder %s5410_s23, %s5410_s23 }
  0x7e   :  { %p5417_p12 = por %p5416_p11, %p5415_p10 }
  0x80   :  { %p5418_p13 = pnand %p5417_p12, %p5411_p9 }
  0x82   :  { %5421 = shalt.err (!%p5418_p13)
}
  0x83   :  { %189 = dma.hbm_to_vmem [thread:$0]  %s6387_s13, 512, %s184_s27, [#allocation24], %s5687_s28, %s5687_s28, %s5688_s21  }
  0x84   :  { %s5693_s29 = smov [#allocation26]   ;;  %s5694_s30 = smov [#allocation2]  }
  0x85   :  { %s205_s0 = sshll.u32 %s5693_s29, 4  ;;  %s37_s9 = sshll.u32 %s5694_s30, 4  ;;  %s206_s0 = int_to_ptr.vmem [resolvable:$true] %s205_s0  ;;  %s38_s9 = int_to_ptr.vmem [resolvable:$true] %s37_s9 }
  0x86   :  { %s5422_s19 = scalar_lea.hbm %s6389_s15, 2048 }
  0x87   :  { %p5423_p0 = scmp.ne.s32.totalorder %s6389_s15, %s5422_s19  ;;  %p5426_p1 = scmp.lt.u32.totalorder %s5422_s19, %s6389_s15 }
  0x89   :  { %p5428_p2 = pnand %p5426_p1, %p5423_p0 }
  0x8b   :  { %5431 = shalt.err (!%p5428_p2)
}
  0x8c   :  { %s5432_s13 = scalar_lea.vmem %s206_s0, 2048  ;;  %p5437_p4 = scmp.lt.s32.totalorder %s206_s0, %s206_s0 }
  0x8d   :  { %p5433_p3 = scmp.ne.s32.totalorder %s206_s0, %s5432_s13  ;;  %p5438_p5 = scmp.lt.s32.totalorder %s5432_s13, %s5432_s13 }
  0x8f   :  { %p5439_p6 = por %p5438_p5, %p5437_p4 }
  0x91   :  { %p5440_p7 = pnand %p5439_p6, %p5433_p3 }
  0x93   :  { %5443 = shalt.err (!%p5440_p7)
}
  0x94   :  { %211 = dma.hbm_to_vmem [thread:$0]  %s6389_s15, 2048, %s206_s0, [#allocation27], %s5687_s28, %s5687_s28, %s5688_s21  }
  0x95   :  { %s6397_s23 = sld [smem:[#allocation40_spill]] }
  0x9b   :  { %s5444_s11 = scalar_lea.hbm %s6397_s23, 256 }
  0x9c   :  { %p5445_p8 = scmp.ne.s32.totalorder %s6397_s23, %s5444_s11  ;;  %p5448_p9 = scmp.lt.u32.totalorder %s5444_s11, %s6397_s23 }
  0x9e   :  { %p5450_p10 = pnand %p5448_p9, %p5445_p8 }
  0xa0   :  { %5453 = shalt.err (!%p5450_p10)
}
  0xa1   :  { %s5454_s18 = scalar_lea.vmem %s38_s9, 256  ;;  %p5459_p12 = scmp.lt.s32.totalorder %s38_s9, %s38_s9 }
  0xa2   :  { %p5455_p11 = scmp.ne.s32.totalorder %s38_s9, %s5454_s18  ;;  %p5460_p13 = scmp.lt.s32.totalorder %s5454_s18, %s5454_s18 }
  0xa4   :  { %p5461_p0 = por %p5460_p13, %p5459_p12 }
  0xa6   :  { %p5462_p1 = pnand %p5461_p0, %p5455_p11 }
  0xa8   :  { %5465 = shalt.err (!%p5462_p1)
}
  0xa9   :  { %43 = dma.hbm_to_vmem [thread:$0]  %s6397_s23, 256, %s38_s9, [#allocation3], %s5687_s28, %s5687_s28, %s5688_s21  }
  0xaa   :  { %s5695_s19 = smov [#allocation7]   ;;  %s5696_s22 = smov [#allocation10]  }
  0xab   :  { %s60_s7 = sshll.u32 %s5695_s19, 4  ;;  %s81_s1 = sshll.u32 %s5696_s22, 4  ;;  %s61_s7 = int_to_ptr.vmem [resolvable:$true] %s60_s7  ;;  %s82_s1 = int_to_ptr.vmem [resolvable:$true] %s81_s1 }
  0xac   :  { %s5466_s27 = scalar_lea.hbm %s6376_s2, 16 }
  0xad   :  { %p5467_p2 = scmp.ne.s32.totalorder %s6376_s2, %s5466_s27  ;;  %p5470_p3 = scmp.lt.u32.totalorder %s5466_s27, %s6376_s2 }
  0xaf   :  { %p5472_p4 = pnand %p5470_p3, %p5467_p2 }
  0xb1   :  { %5475 = shalt.err (!%p5472_p4)
}
  0xb2   :  { %s5476_s9 = scalar_lea.vmem %s61_s7, 16  ;;  %s5480_s23 = scalar_lea.vmem %s61_s7, 32 }
  0xb3   :  { %p5477_p5 = scmp.ne.s32.totalorder %s61_s7, %s5476_s9  ;;  %p5481_p6 = scmp.lt.s32.totalorder %s61_s7, %s61_s7 }
  0xb4   :  { %p5482_p7 = scmp.lt.s32.totalorder %s5480_s23, %s5476_s9 }
  0xb6   :  { %p5483_p8 = por %p5482_p7, %p5481_p6 }
  0xb8   :  { %p5484_p9 = pnand %p5483_p8, %p5477_p5 }
  0xba   :  { %5487 = shalt.err (!%p5484_p9)
}
  0xbb   :  { %63 = dma.hbm_to_vmem [thread:$0]  %s6376_s2, 16, %s61_s7, [#allocation6]  }
  0xbc   :  { %s5488_s18 = scalar_lea.hbm %s6378_s4, 64 }
  0xbd   :  { %p5489_p10 = scmp.ne.s32.totalorder %s6378_s4, %s5488_s18  ;;  %p5492_p11 = scmp.lt.u32.totalorder %s5488_s18, %s6378_s4 }
  0xbf   :  { %p5494_p12 = pnand %p5492_p11, %p5489_p10 }
  0xc1   :  { %5497 = shalt.err (!%p5494_p12)
}
  0xc2   :  { %s5498_s5 = scalar_lea.vmem %s82_s1, 64  ;;  %p5503_p0 = scmp.lt.s32.totalorder %s82_s1, %s82_s1 }
  0xc3   :  { %p5499_p13 = scmp.ne.s32.totalorder %s82_s1, %s5498_s5  ;;  %p5504_p1 = scmp.lt.s32.totalorder %s5498_s5, %s5498_s5 }
  0xc5   :  { %p5505_p2 = por %p5504_p1, %p5503_p0 }
  0xc7   :  { %p5506_p3 = pnand %p5505_p2, %p5499_p13 }
  0xc9   :  { %5509 = shalt.err (!%p5506_p3)
}
  0xca   :  { %s5697_s2 = smov 16   ;;  %s5698_s7 = smov 1  }
  0xcb   :  { %87 = dma.hbm_to_vmem [thread:$0]  %s6378_s4, 64, %s82_s1, [#allocation9], %s5697_s2, %s5697_s2, %s5698_s7  }
  0xcc   :  { %s5699_s3 = smov [#allocation13]   ;;  %s5700_s25 = smov [#allocation16]  }
  0xcd   :  { %s105_s24 = sshll.u32 %s5699_s3, 4  ;;  %s129_s11 = sshll.u32 %s5700_s25, 4  ;;  %s106_s24 = int_to_ptr.vmem [resolvable:$true] %s105_s24  ;;  %s130_s11 = int_to_ptr.vmem [resolvable:$true] %s129_s11 }
  0xce   :  { %s5510_s20 = scalar_lea.hbm %s6380_s6, 64 }
  0xcf   :  { %p5511_p4 = scmp.ne.s32.totalorder %s6380_s6, %s5510_s20  ;;  %p5514_p5 = scmp.lt.u32.totalorder %s5510_s20, %s6380_s6 }
  0xd1   :  { %p5516_p6 = pnand %p5514_p5, %p5511_p4 }
  0xd3   :  { %5519 = shalt.err (!%p5516_p6)
}
  0xd4   :  { %s5520_s4 = scalar_lea.vmem %s106_s24, 64  ;;  %p5525_p8 = scmp.lt.s32.totalorder %s106_s24, %s106_s24 }
  0xd5   :  { %p5521_p7 = scmp.ne.s32.totalorder %s106_s24, %s5520_s4  ;;  %p5526_p9 = scmp.lt.s32.totalorder %s5520_s4, %s5520_s4 }
  0xd7   :  { %p5527_p10 = por %p5526_p9, %p5525_p8 }
  0xd9   :  { %p5528_p11 = pnand %p5527_p10, %p5521_p7 }
  0xdb   :  { %5531 = shalt.err (!%p5528_p11)
}
  0xdc   :  { %111 = dma.hbm_to_vmem [thread:$0]  %s6380_s6, 64, %s106_s24, [#allocation12], %s5697_s2, %s5697_s2, %s5698_s7  }
  0xdd   :  { %s5532_s22 = scalar_lea.hbm %s6382_s8, 64 }
  0xde   :  { %p5533_p12 = scmp.ne.s32.totalorder %s6382_s8, %s5532_s22  ;;  %p5536_p13 = scmp.lt.u32.totalorder %s5532_s22, %s6382_s8 }
  0xe0   :  { %p5538_p0 = pnand %p5536_p13, %p5533_p12 }
  0xe2   :  { %5541 = shalt.err (!%p5538_p0)
}
  0xe3   :  { %s5542_s25 = scalar_lea.vmem %s130_s11, 64  ;;  %p5547_p2 = scmp.lt.s32.totalorder %s130_s11, %s130_s11 }
  0xe4   :  { %p5543_p1 = scmp.ne.s32.totalorder %s130_s11, %s5542_s25  ;;  %p5548_p3 = scmp.lt.s32.totalorder %s5542_s25, %s5542_s25 }
  0xe6   :  { %p5549_p4 = por %p5548_p3, %p5547_p2 }
  0xe8   :  { %p5550_p5 = pnand %p5549_p4, %p5543_p1 }
  0xea   :  { %5553 = shalt.err (!%p5550_p5)
}
  0xeb   :  { %135 = dma.hbm_to_vmem [thread:$0]  %s6382_s8, 64, %s130_s11, [#allocation15], %s5697_s2, %s5697_s2, %s5698_s7  }
  0xec   :  { %s5701_s9 = smov [#allocation19]   ;;  %s5702_s20 = smov [#allocation22]  }
  0xed   :  { %s154_s23 = sshll.u32 %s5701_s9, 4  ;;  %s174_s29 = sshll.u32 %s5702_s20, 4  ;;  %s155_s23 = int_to_ptr.vmem [resolvable:$true] %s154_s23  ;;  %s175_s29 = int_to_ptr.vmem [resolvable:$true] %s174_s29 }
  0xee   :  { %s5554_s18 = scalar_lea.hbm %s6384_s10, 16 }
  0xef   :  { %p5555_p6 = scmp.ne.s32.totalorder %s6384_s10, %s5554_s18  ;;  %p5558_p7 = scmp.lt.u32.totalorder %s5554_s18, %s6384_s10 }
  0xf1   :  { %p5560_p8 = pnand %p5558_p7, %p5555_p6 }
  0xf3   :  { %5563 = shalt.err (!%p5560_p8)
}
  0xf4   :  { %s5564_s8 = scalar_lea.vmem %s155_s23, 16  ;;  %s5568_s2 = scalar_lea.vmem %s155_s23, 32 }
  0xf5   :  { %p5565_p9 = scmp.ne.s32.totalorder %s155_s23, %s5564_s8  ;;  %p5569_p10 = scmp.lt.s32.totalorder %s155_s23, %s155_s23 }
  0xf6   :  { %p5570_p11 = scmp.lt.s32.totalorder %s5568_s2, %s5564_s8 }
  0xf8   :  { %p5571_p12 = por %p5570_p11, %p5569_p10 }
  0xfa   :  { %p5572_p13 = pnand %p5571_p12, %p5565_p9 }
  0xfc   :  { %5575 = shalt.err (!%p5572_p13)
}
  0xfd   :  { %157 = dma.hbm_to_vmem [thread:$0]  %s6384_s10, 16, %s155_s23, [#allocation18]  }
  0xfe   :  { %s5576_s5 = scalar_lea.hbm %s6386_s12, 16 }
  0xff   :  { %p5577_p0 = scmp.ne.s32.totalorder %s6386_s12, %s5576_s5  ;;  %p5580_p1 = scmp.lt.u32.totalorder %s5576_s5, %s6386_s12 }
 0x101   :  { %p5582_p2 = pnand %p5580_p1, %p5577_p0 }
 0x103   :  { %5585 = shalt.err (!%p5582_p2)
}
 0x104   :  { %s5586_s6 = scalar_lea.vmem %s175_s29, 16  ;;  %s5590_s24 = scalar_lea.vmem %s175_s29, 32 }
 0x105   :  { %p5587_p3 = scmp.ne.s32.totalorder %s175_s29, %s5586_s6  ;;  %p5591_p4 = scmp.lt.s32.totalorder %s175_s29, %s175_s29 }
 0x106   :  { %p5592_p5 = scmp.lt.s32.totalorder %s5590_s24, %s5586_s6 }
 0x108   :  { %p5593_p6 = por %p5592_p5, %p5591_p4 }
 0x10a   :  { %p5594_p7 = pnand %p5593_p6, %p5587_p3 }
 0x10c   :  { %5597 = shalt.err (!%p5594_p7)
}
 0x10d   :  { %177 = dma.hbm_to_vmem [thread:$0]  %s6386_s12, 16, %s175_s29, [#allocation21]  }
 0x10e   :  { %s5703_s23 = smov [#allocation25]   ;;  %s5704_s30 = smov [#allocation28]  }
 0x10f   :  { %s196_s20 = sshll.u32 %s5703_s23, 4  ;;  %s218_s26 = sshll.u32 %s5704_s30, 4  ;;  %s197_s20 = int_to_ptr.vmem [resolvable:$true] %s196_s20  ;;  %s219_s26 = int_to_ptr.vmem [resolvable:$true] %s218_s26 }
 0x110   :  { %s5598_s1 = scalar_lea.hbm %s6388_s14, 16 }
 0x111   :  { %p5599_p8 = scmp.ne.s32.totalorder %s6388_s14, %s5598_s1  ;;  %p5602_p9 = scmp.lt.u32.totalorder %s5598_s1, %s6388_s14 }
 0x113   :  { %p5604_p10 = pnand %p5602_p9, %p5599_p8 }
 0x115   :  { %5607 = shalt.err (!%p5604_p10)
}
 0x116   :  { %s5608_s12 = scalar_lea.vmem %s197_s20, 16  ;;  %s5612_s29 = scalar_lea.vmem %s197_s20, 32 }
 0x117   :  { %p5609_p11 = scmp.ne.s32.totalorder %s197_s20, %s5608_s12  ;;  %p5613_p12 = scmp.lt.s32.totalorder %s197_s20, %s197_s20 }
 0x118   :  { %p5614_p13 = scmp.lt.s32.totalorder %s5612_s29, %s5608_s12 }
 0x11a   :  { %p5615_p0 = por %p5614_p13, %p5613_p12 }
 0x11c   :  { %p5616_p1 = pnand %p5615_p0, %p5609_p11 }
 0x11e   :  { %5619 = shalt.err (!%p5616_p1)
}
 0x11f   :  { %199 = dma.hbm_to_vmem [thread:$0]  %s6388_s14, 16, %s197_s20, [#allocation24]  }
 0x120   :  { %s5620_s5 = scalar_lea.hbm %s6390_s16, 16 }
 0x121   :  { %p5621_p2 = scmp.ne.s32.totalorder %s6390_s16, %s5620_s5  ;;  %p5624_p3 = scmp.lt.u32.totalorder %s5620_s5, %s6390_s16 }
 0x123   :  { %p5626_p4 = pnand %p5624_p3, %p5621_p2 }
 0x125   :  { %5629 = shalt.err (!%p5626_p4)
}
 0x126   :  { %s5630_s6 = scalar_lea.vmem %s219_s26, 16  ;;  %s5634_s24 = scalar_lea.vmem %s219_s26, 32 }
 0x127   :  { %p5631_p5 = scmp.ne.s32.totalorder %s219_s26, %s5630_s6  ;;  %p5635_p6 = scmp.lt.s32.totalorder %s219_s26, %s219_s26 }
 0x128   :  { %p5636_p7 = scmp.lt.s32.totalorder %s5634_s24, %s5630_s6 }
 0x12a   :  { %p5637_p8 = por %p5636_p7, %p5635_p6 }
 0x12c   :  { %p5638_p9 = pnand %p5637_p8, %p5631_p5 }
 0x12e   :  { %5641 = shalt.err (!%p5638_p9)
}
 0x12f   :  { %221 = dma.hbm_to_vmem [thread:$0]  %s6390_s16, 16, %s219_s26, [#allocation27]  }
 0x130   :  { %5664 = dma.done.wait [#allocation3], 256  }
 0x131   :  { %5665 = vsyncadd [#allocation3], 4294967040 }
 0x132   :  { %5666 = dma.done.wait [#allocation6], 32  }
 0x133   :  { %5667 = vsyncadd [#allocation6], 4294967264 }
 0x134   :  { %5668 = dma.done.wait [#allocation9], 2112  }
 0x135   :  { %5669 = vsyncadd [#allocation9], 4294965184 }
 0x136   :  { %5670 = dma.done.wait [#allocation12], 2112  }
 0x137   :  { %5671 = vsyncadd [#allocation12], 4294965184 }
 0x138   :  { %5672 = dma.done.wait [#allocation15], 2112  }
 0x139   :  { %5673 = vsyncadd [#allocation15], 4294965184 }
 0x13a   :  { %5674 = dma.done.wait [#allocation18], 528  }
 0x13b   :  { %5675 = vsyncadd [#allocation18], 4294966768 }
 0x13c   :  { %5676 = dma.done.wait [#allocation21], 32  }
 0x13d   :  { %5677 = vsyncadd [#allocation21], 4294967264 }
 0x13e   :  { %5678 = dma.done.wait [#allocation24], 528  }
 0x13f   :  { %5679 = vsyncadd [#allocation24], 4294966768 }
 0x140   :  { %5680 = dma.done.wait [#allocation27], 2064  }
 0x141   :  { %5681 = vsyncadd [#allocation27], 4294965232  ;;  %vm275_vm0 = vcmask 261120   ;;  %v273_v0 = vld [vmem:[#allocation2] sm:$0xff]  ;;  %v274_v1 = vld [vmem:[#allocation2 + $0x8] sm:$0xff]  ;;  %v5705_v19 = vmov 0.0|0.0  }
 0x142   :  { %v276_v2 = vsel %vm275_vm0, %v273_v0, 0.0  ;;  %v279_v3 = vsel %vm275_vm0, %v274_v1, 0.0  ;;  %v321_v14 = vld [vmem:[#allocation8] sm:$0xff]  ;;  %v322_v15 = vld [vmem:[#allocation8 + $0x8] sm:$0xff]  ;;  %5013 = vmatprep.subr.bf16.mxu0 %v5705_v19  ;;  %5031 = vmatprep.subr.bf16.mxu1 %v5705_v19  ;;  %v323_v21 = vld [vmem:[#allocation8 + $0x10] sm:$0xff]  ;;  %vm5706_vm1 = vmmov 0  }
 0x143   :  { %277 = vadd.xlane.f32.xlu0 %v276_v2  ;;  %v333_v16 = vld [vmem:[#allocation8 + $0x60] sm:$0xff]  ;;  %v6037_v17 = vpack.c.bf16 %v322_v15, %v321_v14  ;;  %v334_v18 = vld [vmem:[#allocation8 + $0x68] sm:$0xff]  ;;  %v324_v22 = vld [vmem:[#allocation8 + $0x18] sm:$0xff]  ;;  %v5707_v27 = vmov 0.0   ;;  %vm2147_vm2 = vcmask 64512   ;;  %s5708_s16 = smov [#allocation29]  }
 0x144   :  { %v5032_v20 = vpack.c.bf16 %v334_v18, %v333_v16  ;;  %v335_v23 = vld [vmem:[#allocation8 + $0x70] sm:$0xff]  ;;  %v6044_v24 = vpack.c.bf16 %v324_v22, %v323_v21  ;;  %v336_v25 = vld [vmem:[#allocation8 + $0x78] sm:$0xff]  ;;  %4591 = vmatprep.mubr.msk.f32.mxu0 %vm5706_vm1, %v5707_v27  ;;  %4624 = vmatprep.mubr.msk.f32.mxu1 %vm5706_vm1, %v5707_v27  ;;  %v325_v37 = vld [vmem:[#allocation8 + $0x20] sm:$0xff]  ;;  %s4294_s9 = sshll.u32 %s5708_s16, 4  ;;  %s4295_s9 = int_to_ptr.vmem [resolvable:$true] %s4294_s9 }
 0x145   :  { %5015 = vmatpush3.bf16.msra.mxu0 %v6037_v17  ;;  %v5035_v26 = vpack.c.bf16 %v336_v25, %v335_v23  ;;  %v4314_v35 = vld [vmem:[#allocation5] ss:$0 sm:$0xff]  ;;  %v326_v38 = vld [vmem:[#allocation8 + $0x28] sm:$0xff]  ;;  %v4315_v39 = vld [vmem:[#allocation7] ss:$0 sm:$0xff]  ;;  %s5642_s23 = scalar_lea.vmem %s4295_s9, 256  ;;  %p5647_p11 = scmp.lt.s32.totalorder %s4295_s9, %s4295_s9 }
 0x146   :  { %5033 = vmatpush3.bf16.msra.mxu1 %v5032_v20  ;;  %5016 = vmatprep.subr.bf16.mxu0 %v5705_v19  ;;  %v5020_v42 = vpack.c.bf16 %v326_v38, %v325_v37  ;;  %v327_v45 = vld [vmem:[#allocation8 + $0x30] sm:$0xff]  ;;  %v328_v46 = vld [vmem:[#allocation8 + $0x38] sm:$0xff]  ;;  %v329_v49 = vld [vmem:[#allocation8 + $0x40] sm:$0xff]  ;;  %p5643_p10 = scmp.ne.s32.totalorder %s4295_s9, %s5642_s23  ;;  %p5648_p12 = scmp.lt.s32.totalorder %s5642_s23, %s5642_s23 }
 0x147   :  { %280 = vadd.xlane.f32.xlu0 %v279_v3  ;;  %5034 = vmatprep.subr.bf16.mxu1 %v5705_v19  ;;  %v5023_v47 = vpack.c.bf16 %v328_v46, %v327_v45  ;;  %v330_v50 = vld [vmem:[#allocation8 + $0x48] sm:$0xff]  ;;  %v331_v53 = vld [vmem:[#allocation8 + $0x50] sm:$0xff]  ;;  %v332_v54 = vld [vmem:[#allocation8 + $0x58] sm:$0xff] }
 0x148   :  { %v5026_v51 = vpack.c.bf16 %v330_v50, %v329_v49  ;;  %v5029_v55 = vpack.c.bf16 %v332_v54, %v331_v53  ;;  %v935_v56 = vld [vmem:[#allocation11 + $0x20] sm:$0xff]  ;;  %v936_v57 = vld [vmem:[#allocation11 + $0x28] sm:$0xff]  ;;  %v937_v59 = vld [vmem:[#allocation11 + $0x30] sm:$0xff]  ;;  %p5649_p13 = por %p5648_p12, %p5647_p11 }
 0x149   :  { %5018 = vmatpush3.bf16.msra.mxu0 %v6044_v24  ;;  %v5068_v58 = vpack.c.bf16 %v936_v57, %v935_v56  ;;  %v938_v60 = vld [vmem:[#allocation11 + $0x38] sm:$0xff]  ;;  %v943_v62 = vld [vmem:[#allocation11 + $0x60] sm:$0xff]  ;;  %v944_v63 = vld [vmem:[#allocation11 + $0x68] sm:$0xff] }
 0x14a   :  { %5036 = vmatpush3.bf16.msra.mxu1 %v5035_v26  ;;  %5019 = vmatprep.subr.bf16.mxu0 %v5705_v19  ;;  %v5071_v61 = vpack.c.bf16 %v938_v60, %v937_v59  ;;  %v946_v2 = vld [vmem:[#allocation11 + $0x78] sm:$0xff]  ;;  %v1539_v16 = vld [vmem:[#allocation14 + $0x20] sm:$0xff]  ;;  %v1544_v37 = vld [vmem:[#allocation14 + $0x48] sm:$0xff]  ;;  %p5650_p0 = pnand %p5649_p13, %p5643_p10 }
 0x14b   :  { %5043 = vmatprep.subr.bf16.mxu1 %v5705_v19  ;;  %v942_v14 = vld [vmem:[#allocation11 + $0x58] sm:$0xff]  ;;  %v1547_v23 = vld [vmem:[#allocation14 + $0x60] sm:$0xff] }
 0x14c   :  { %v1542_v21 = vld [vmem:[#allocation14 + $0x38] sm:$0xff] }
 0x14d   :  { %v4319_v57 = vld [vmem:[#allocation10 + $0x3] ss:$0 sm:$0xff] }
 0x1d0   :  { %v278_v4 = vpop.xlane.xlu0 %277 }
 0x1d1   :  { %v283_v5 = vmul.f32 0.03125, %v278_v4  ;;  %v931_v4 = vld [vmem:[#allocation11] sm:$0xff] }
 0x1d3   :  { %v285_v6 = vsub.f32 %v273_v0, %v283_v5  ;;  %v5080_v0 = vpack.c.bf16 %v944_v63, %v943_v62  ;;  %v932_v5 = vld [vmem:[#allocation11 + $0x8] sm:$0xff] }
 0x1d4   :  { %v281_v7 = vpop.xlane.xlu0 %280 }
 0x1d5   :  { %v284_v8 = vmul.f32 0.03125, %v281_v7  ;;  %v287_v9 = vmul.f32 %v285_v6, %v285_v6  ;;  %v933_v7 = vld [vmem:[#allocation11 + $0x10] sm:$0xff] }
 0x1d7   :  { %v286_v10 = vsub.f32 %v274_v1, %v284_v8  ;;  %v289_v11 = vsel %vm275_vm0, %v287_v9, 0.0  ;;  %v945_v1 = vld [vmem:[#allocation11 + $0x70] sm:$0xff]  ;;  %v934_v8 = vld [vmem:[#allocation11 + $0x18] sm:$0xff] }
 0x1d8   :  { %290 = vadd.xlane.f32.xlu1 %v289_v11  ;;  %v5083_v3 = vpack.c.bf16 %v946_v2, %v945_v1  ;;  %v5065_v9 = vpack.c.bf16 %v934_v8, %v933_v7  ;;  %v940_v11 = vld [vmem:[#allocation11 + $0x48] sm:$0xff]  ;;  %v4316_v2 = vld [vmem:[#allocation10] ss:$0 sm:$0xff]  ;;  %v4329_v7 = vld [vmem:[#allocation13 + $0x1] ss:$0 sm:$0xff] }
 0x1d9   :  { %v288_v12 = vmul.f32 %v286_v10, %v286_v10 }
 0x1db   :  { %v292_v13 = vsel %vm275_vm0, %v288_v12, 0.0 }
 0x1dc   :  { %293 = vadd.xlane.f32.xlu1 %v292_v13  ;;  %v941_v13 = vld [vmem:[#allocation11 + $0x50] sm:$0xff] }
 0x1dd   :  { %v5077_v15 = vpack.c.bf16 %v942_v14, %v941_v13 }
 0x265   :  { %v291_v28 = vpop.xlane.xlu1 %290 }
 0x266   :  { %v295_v29 = vmul.f32 0.03125, %v291_v28  ;;  %v1550_v28 = vld [vmem:[#allocation14 + $0x78] sm:$0xff] }
 0x268   :  { %v297_v30 = vadd.f32 1e-06, %v295_v29 }
 0x269   :  { %v294_v31 = vpop.xlane.xlu1 %293 }
 0x26a   :  { %5222 = vrsqrt.f32 %v297_v30  ;;  %v296_v32 = vmul.f32 0.03125, %v294_v31  ;;  %v1535_v30 = vld [vmem:[#allocation14] sm:$0xff]  ;;  %v1536_v31 = vld [vmem:[#allocation14 + $0x8] sm:$0xff] }
 0x26c   :  { %v298_v33 = vadd.f32 1e-06, %v296_v32  ;;  %v5110_v32 = vpack.c.bf16 %v1536_v31, %v1535_v30 }
 0x26e   :  { %5224 = vrsqrt.f32 %v298_v33  ;;  %v1537_v33 = vld [vmem:[#allocation14 + $0x10] sm:$0xff] }
 0x274   :  { %v5223_v34 = vpop.eup %5222 }
 0x275   :  { %v301_v36 = vmul.f32 %v5223_v34, %v285_v6  ;;  %v5062_v6 = vpack.c.bf16 %v932_v5, %v931_v4  ;;  %v1538_v34 = vld [vmem:[#allocation14 + $0x18] sm:$0xff] }
 0x276   :  { %v4328_v4 = vld [vmem:[#allocation13] ss:$0 sm:$0xff] }
 0x277   :  { %v310_v40 = vmul.f32 %v4314_v35, %v301_v36  ;;  %v1543_v36 = vld [vmem:[#allocation14 + $0x40] sm:$0xff] }
 0x278   :  { %v5225_v41 = vpop.eup %5224  ;;  %v5122_v38 = vpack.c.bf16 %v1544_v37, %v1543_v36 }
 0x279   :  { %v6053_v43 = vadd.f32 %v4315_v39, %v310_v40  ;;  %v302_v44 = vmul.f32 %v5225_v41, %v286_v10  ;;  %v939_v10 = vld [vmem:[#allocation11 + $0x40] sm:$0xff] }
 0x27a   :  { %v5074_v12 = vpack.c.bf16 %v940_v11, %v939_v10  ;;  %v1546_v40 = vld [vmem:[#allocation14 + $0x58] sm:$0xff] }
 0x27b   :  { %4592 = vmatmul.mubr.msk.f32.vlgmr.msra.gmra.mrb[0].mxu0 %vm275_vm0, %v6053_v43  ;;  %4625 = vmatmul.mubr.msk.f32.vlgmr.msra.gmra.mrb[0].mxu1 %vm275_vm0, %v6053_v43  ;;  %v311_v48 = vmul.f32 %v4314_v35, %v302_v44  ;;  %v5113_v35 = vpack.c.bf16 %v1538_v34, %v1537_v33  ;;  %v4341_v33 = vld [vmem:[#allocation16 + $0x1] ss:$0 sm:$0xff] }
 0x27c   :  { %5021 = vmatpush3.bf16.msra.mxu0 %v5020_v42  ;;  %5045 = vmatpush3.bf16.msra.mxu1 %v5020_v42 }
 0x27d   :  { %5022 = vmatprep.subr.bf16.mxu0 %v5705_v19  ;;  %5046 = vmatprep.subr.bf16.mxu1 %v5705_v19  ;;  %v6065_v52 = vadd.f32 %v4315_v39, %v311_v48  ;;  %v1545_v39 = vld [vmem:[#allocation14 + $0x50] sm:$0xff] }
 0x27e   :  { %4602 = vmatprep.mubr.msk.f32.mxu0 %vm5706_vm1, %v5707_v27  ;;  %4646 = vmatprep.mubr.msk.f32.mxu1 %vm5706_vm1, %v5707_v27  ;;  %v5125_v41 = vpack.c.bf16 %v1546_v40, %v1545_v39 }
 0x280   :  { %5024 = vmatpush3.bf16.msra.mxu0 %v5023_v47  ;;  %5048 = vmatpush3.bf16.msra.mxu1 %v5023_v47 }
 0x281   :  { %5025 = vmatprep.subr.bf16.mxu0 %v5705_v19  ;;  %5055 = vmatprep.subr.bf16.mxu1 %v5705_v19 }
 0x283   :  { %4603 = vmatmul.mubr.msk.f32.vlgmr.msra.gmra.mrb[2].mxu0 %vm275_vm0, %v6053_v43  ;;  %4647 = vmatmul.mubr.msk.f32.vlgmr.msra.gmra.mrb[2].mxu1 %vm275_vm0, %v6065_v52 }
 0x284   :  { %5027 = vmatpush3.bf16.msra.mxu0 %v5026_v51  ;;  %5057 = vmatpush3.bf16.msra.mxu1 %v5032_v20  ;;  %v1541_v20 = vld [vmem:[#allocation14 + $0x30] sm:$0xff] }
 0x285   :  { %5028 = vmatprep.subr.bf16.mxu0 %v5705_v19  ;;  %5058 = vmatprep.subr.bf16.mxu1 %v5705_v19  ;;  %v5119_v22 = vpack.c.bf16 %v1542_v21, %v1541_v20  ;;  %v4330_v20 = vld [vmem:[#allocation13 + $0x2] ss:$0 sm:$0xff] }
 0x286   :  { %4613 = vmatprep.mubr.msk.f32.mxu0 %vm5706_vm1, %v5707_v27  ;;  %4668 = vmatprep.mubr.msk.f32.mxu1 %vm5706_vm1, %v5707_v27 }
 0x288   :  { %5030 = vmatpush3.bf16.msra.mxu0 %v5029_v55  ;;  %5060 = vmatpush3.bf16.msra.mxu1 %v5035_v26  ;;  %v1549_v26 = vld [vmem:[#allocation14 + $0x70] sm:$0xff] }
 0x289   :  { %5037 = vmatprep.subr.bf16.mxu0 %v5705_v19  ;;  %5067 = vmatprep.subr.bf16.mxu1 %v5705_v19  ;;  %v5131_v29 = vpack.c.bf16 %v1550_v28, %v1549_v26 }
 0x28b   :  { %4614 = vmatmul.mubr.msk.f32.vlgmr.msra.gmra.mrb[4].mxu0 %vm275_vm0, %v6053_v43  ;;  %4669 = vmatmul.mubr.msk.f32.vlgmr.msra.gmra.mrb[4].mxu1 %vm275_vm0, %v6065_v52 }
 0x28c   :  { %5039 = vmatpush3.bf16.msra.mxu0 %v6037_v17  ;;  %5069 = vmatpush3.bf16.msra.mxu1 %v5068_v58  ;;  %v1540_v17 = vld [vmem:[#allocation14 + $0x28] sm:$0xff] }
 0x28d   :  { %5040 = vmatprep.subr.bf16.mxu0 %v5705_v19  ;;  %5070 = vmatprep.subr.bf16.mxu1 %v5705_v19  ;;  %v5116_v18 = vpack.c.bf16 %v1540_v17, %v1539_v16  ;;  %v4318_v17 = vld [vmem:[#allocation10 + $0x2] ss:$0 sm:$0xff] }
 0x28e   :  { %4635 = vmatprep.mubr.msk.f32.mxu0 %vm5706_vm1, %v5707_v27  ;;  %4690 = vmatprep.mubr.msk.f32.mxu1 %vm5706_vm1, %v5707_v27 }
 0x290   :  { %5042 = vmatpush3.bf16.msra.mxu0 %v6044_v24  ;;  %5072 = vmatpush3.bf16.msra.mxu1 %v5071_v61  ;;  %v1548_v24 = vld [vmem:[#allocation14 + $0x68] sm:$0xff] }
 0x291   :  { %5049 = vmatprep.subr.bf16.mxu0 %v5705_v19  ;;  %5079 = vmatprep.subr.bf16.mxu1 %v5705_v19  ;;  %v5128_v25 = vpack.c.bf16 %v1548_v24, %v1547_v23 }
 0x293   :  { %4636 = vmatmul.mubr.msk.f32.vlgmr.msra.gmra.mrb[6].mxu0 %vm275_vm0, %v6065_v52  ;;  %4691 = vmatmul.mubr.msk.f32.vlgmr.msra.gmra.mrb[6].mxu1 %vm275_vm0, %v6053_v43 }
 0x294   :  { %5051 = vmatpush3.bf16.msra.mxu0 %v5026_v51  ;;  %5081 = vmatpush3.bf16.msra.mxu1 %v5080_v0 }
 0x295   :  { %5052 = vmatprep.subr.bf16.mxu0 %v5705_v19  ;;  %5082 = vmatprep.subr.bf16.mxu1 %v5705_v19 }
 0x296   :  { %4657 = vmatprep.mubr.msk.f32.mxu0 %vm5706_vm1, %v5707_v27  ;;  %4712 = vmatprep.mubr.msk.f32.mxu1 %vm5706_vm1, %v5707_v27 }
 0x298   :  { %5054 = vmatpush3.bf16.msra.mxu0 %v5029_v55  ;;  %5084 = vmatpush3.bf16.msra.mxu1 %v5083_v3 }
 0x299   :  { %5061 = vmatprep.subr.bf16.mxu0 %v5705_v19  ;;  %5091 = vmatprep.subr.bf16.mxu1 %v5705_v19 }
 0x29b   :  { %4658 = vmatmul.mubr.msk.f32.vlgmr.msra.gmra.mrb[8].mxu0 %vm275_vm0, %v6065_v52  ;;  %4713 = vmatmul.mubr.msk.f32.vlgmr.msra.gmra.mrb[8].mxu1 %vm275_vm0, %v6053_v43 }
 0x29c   :  { %5063 = vmatpush3.bf16.msra.mxu0 %v5062_v6  ;;  %5093 = vmatpush3.bf16.msra.mxu1 %v5068_v58  ;;  %v4331_v58 = vld [vmem:[#allocation13 + $0x3] ss:$0 sm:$0xff] }
 0x29d   :  { %5064 = vmatprep.subr.bf16.mxu0 %v5705_v19  ;;  %5094 = vmatprep.subr.bf16.mxu1 %v5705_v19 }
 0x29e   :  { %4679 = vmatprep.mubr.msk.f32.mxu0 %vm5706_vm1, %v5707_v27  ;;  %4734 = vmatprep.mubr.msk.f32.mxu1 %vm5706_vm1, %v5707_v27 }
 0x2a0   :  { %5066 = vmatpush3.bf16.msra.mxu0 %v5065_v9  ;;  %5096 = vmatpush3.bf16.msra.mxu1 %v5071_v61 }
 0x2a1   :  { %5073 = vmatprep.subr.bf16.mxu0 %v5705_v19  ;;  %5103 = vmatprep.subr.bf16.mxu1 %v5705_v19 }
 0x2a3   :  { %4680 = vmatmul.mubr.msk.f32.vlgmr.msra.gmra.mrb[10].mxu0 %vm275_vm0, %v6053_v43  ;;  %4735 = vmatmul.mubr.msk.f32.vlgmr.msra.gmra.mrb[10].mxu1 %vm275_vm0, %v6065_v52 }
 0x2a4   :  { %5075 = vmatpush3.bf16.msra.mxu0 %v5074_v12  ;;  %5105 = vmatpush3.bf16.msra.mxu1 %v5080_v0 }
 0x2a5   :  { %5076 = vmatprep.subr.bf16.mxu0 %v5705_v19  ;;  %5106 = vmatprep.subr.bf16.mxu1 %v5705_v19 }
 0x2a6   :  { %4701 = vmatprep.mubr.msk.f32.mxu0 %vm5706_vm1, %v5707_v27  ;;  %4756 = vmatprep.mubr.msk.f32.mxu1 %vm5706_vm1, %v5707_v27 }
 0x2a8   :  { %5078 = vmatpush3.bf16.msra.mxu0 %v5077_v15  ;;  %5108 = vmatpush3.bf16.msra.mxu1 %v5083_v3  ;;  %v4317_v3 = vld [vmem:[#allocation10 + $0x1] ss:$0 sm:$0xff] }
 0x2a9   :  { %5085 = vmatprep.subr.bf16.mxu0 %v5705_v19  ;;  %5115 = vmatprep.subr.bf16.mxu1 %v5705_v19 }
 0x2ab   :  { %4702 = vmatmul.mubr.msk.f32.vlgmr.msra.gmra.mrb[12].mxu0 %vm275_vm0, %v6053_v43  ;;  %4757 = vmatmul.mubr.msk.f32.vlgmr.msra.gmra.mrb[12].mxu1 %vm275_vm0, %v6065_v52 }
 0x2ac   :  { %5087 = vmatpush3.bf16.msra.mxu0 %v5062_v6  ;;  %5117 = vmatpush3.bf16.msra.mxu1 %v5116_v18 }
 0x2ad   :  { %5088 = vmatprep.subr.bf16.mxu0 %v5705_v19  ;;  %5118 = vmatprep.subr.bf16.mxu1 %v5705_v19 }
 0x2ae   :  { %4723 = vmatprep.mubr.msk.f32.mxu0 %vm5706_vm1, %v5707_v27  ;;  %4778 = vmatprep.mubr.msk.f32.mxu1 %vm5706_vm1, %v5707_v27 }
 0x2b0   :  { %5090 = vmatpush3.bf16.msra.mxu0 %v5065_v9  ;;  %5120 = vmatpush3.bf16.msra.mxu1 %v5119_v22 }
 0x2b1   :  { %5097 = vmatprep.subr.bf16.mxu0 %v5705_v19  ;;  %5127 = vmatprep.subr.bf16.mxu1 %v5705_v19 }
 0x2b3   :  { %4724 = vmatmul.mubr.msk.f32.vlgmr.msra.gmra.mrb[14].mxu0 %vm275_vm0, %v6065_v52  ;;  %4779 = vmatmul.mubr.msk.f32.vlgmr.msra.gmra.mrb[14].mxu1 %vm275_vm0, %v6053_v43 }
 0x2b4   :  { %5099 = vmatpush3.bf16.msra.mxu0 %v5074_v12  ;;  %5129 = vmatpush3.bf16.msra.mxu1 %v5128_v25 }
 0x2b5   :  { %5100 = vmatprep.subr.bf16.mxu0 %v5705_v19  ;;  %5130 = vmatprep.subr.bf16.mxu1 %v5705_v19 }
 0x2b6   :  { %4745 = vmatprep.mubr.msk.f32.mxu0 %vm5706_vm1, %v5707_v27  ;;  %4800 = vmatprep.mubr.msk.f32.mxu1 %vm5706_vm1, %v5707_v27 }
 0x2b8   :  { %5102 = vmatpush3.bf16.msra.mxu0 %v5077_v15  ;;  %5132 = vmatpush3.bf16.msra.mxu1 %v5131_v29 }
 0x2b9   :  { %5109 = vmatprep.subr.bf16.mxu0 %v5705_v19  ;;  %5139 = vmatprep.subr.bf16.mxu1 %v5705_v19 }
 0x2bb   :  { %4746 = vmatmul.mubr.msk.f32.vlgmr.msra.gmra.mrb[16].mxu0 %vm275_vm0, %v6065_v52  ;;  %4801 = vmatmul.mubr.msk.f32.vlgmr.msra.gmra.mrb[16].mxu1 %vm275_vm0, %v6053_v43 }
 0x2bc   :  { %5111 = vmatpush3.bf16.msra.mxu0 %v5110_v32  ;;  %5141 = vmatpush3.bf16.msra.mxu1 %v5116_v18 }
 0x2bd   :  { %5112 = vmatprep.subr.bf16.mxu0 %v5705_v19  ;;  %5142 = vmatprep.subr.bf16.mxu1 %v5705_v19 }
 0x2be   :  { %4767 = vmatprep.mubr.msk.f32.mxu0 %vm5706_vm1, %v5707_v27  ;;  %4822 = vmatprep.mubr.msk.f32.mxu1 %vm5706_vm1, %v5707_v27 }
 0x2c0   :  { %5114 = vmatpush3.bf16.msra.mxu0 %v5113_v35  ;;  %5144 = vmatpush3.bf16.msra.mxu1 %v5119_v22 }
 0x2c1   :  { %5121 = vmatprep.subr.bf16.mxu0 %v5705_v19  ;;  %5151 = vmatprep.subr.bf16.mxu1 %v5705_v19 }
 0x2c3   :  { %4768 = vmatmul.mubr.msk.f32.vlgmr.msra.gmra.mrb[18].mxu0 %vm275_vm0, %v6053_v43  ;;  %4823 = vmatmul.mubr.msk.f32.vlgmr.msra.gmra.mrb[18].mxu1 %vm275_vm0, %v6065_v52 }
 0x2c4   :  { %5123 = vmatpush3.bf16.msra.mxu0 %v5122_v38  ;;  %5153 = vmatpush3.bf16.msra.mxu1 %v5128_v25 }
 0x2c5   :  { %5124 = vmatprep.subr.bf16.mxu0 %v5705_v19  ;;  %5154 = vmatprep.subr.bf16.mxu1 %v5705_v19 }
 0x2c6   :  { %4789 = vmatprep.mubr.msk.f32.mxu0 %vm5706_vm1, %v5707_v27  ;;  %4844 = vmatprep.mubr.msk.f32.mxu1 %vm5706_vm1, %v5707_v27 }
 0x2c8   :  { %5126 = vmatpush3.bf16.msra.mxu0 %v5125_v41  ;;  %5156 = vmatpush3.bf16.msra.mxu1 %v5131_v29 }
 0x2c9   :  { %5133 = vmatprep.subr.bf16.mxu0 %v5705_v19  ;;  %4862 = vmatprep.subr.mxu1 %v5707_v27 }
 0x2cb   :  { %4790 = vmatmul.mubr.msk.f32.vlgmr.msra.gmra.mrb[20].mxu0 %vm275_vm0, %v6053_v43  ;;  %4845 = vmatmul.mubr.msk.f32.vlgmr.msra.gmra.mrb[20].mxu1 %vm275_vm0, %v6065_v52 }
 0x2cc   :  { %5135 = vmatpush3.bf16.msra.mxu0 %v5110_v32  ;;  %4811 = vmatprep.mubr.msk.f32.mxu0 %vm5706_vm1, %v5707_v27 }
 0x2cd   :  { %5136 = vmatprep.subr.bf16.mxu0 %v5705_v19  ;;  %4864 = vmatprep.mubr.msk.f32.mxu1 %vm5706_vm1, %v5707_v27 }
 0x2d0   :  { %5138 = vmatpush3.bf16.msra.mxu0 %v5113_v35 }
 0x2d1   :  { %5145 = vmatprep.subr.bf16.mxu0 %v5705_v19 }
 0x2d3   :  { %4812 = vmatmul.mubr.msk.f32.vlgmr.msra.gmra.mrb[22].mxu0 %vm275_vm0, %v6065_v52 }
 0x2d4   :  { %5147 = vmatpush3.bf16.msra.mxu0 %v5122_v38  ;;  %4833 = vmatprep.mubr.msk.f32.mxu0 %vm5706_vm1, %v5707_v27 }
 0x2d5   :  { %5148 = vmatprep.subr.bf16.mxu0 %v5705_v19 }
 0x2d8   :  { %5150 = vmatpush3.bf16.msra.mxu0 %v5125_v41 }
 0x2d9   :  { %4847 = vmatprep.subr.mxu0 %v5707_v27 }
 0x2db   :  { %4834 = vmatmul.mubr.msk.f32.vlgmr.msra.gmra.mrb[24].mxu0 %vm275_vm0, %v6065_v52 }
 0x2dc   :  { %4849 = vmatprep.mubr.msk.f32.mxu0 %vm5706_vm1, %v5707_v27 }
 0x34e   :  { %v434_v42 = vpop.f32.mrb[0].mxu0  ;;  %v644_v43 = vpop.f32.mrb[0].mxu1 }
 0x34f   :  { %v4593_v44 = vpop.f32.mrb[1].mxu0  ;;  %v4626_v45 = vpop.f32.mrb[1].mxu1  ;;  %v645_v59 = vadd.f32 %v4319_v57, %v644_v43  ;;  %v435_v5 = vadd.f32 %v4316_v2, %v434_v42 }
 0x351   :  { %v2142_v1 = vmul.f32 0.35355338, %v645_v59  ;;  %v2139_v14 = vmul.f32 0.35355338, %v435_v5 }
 0x356   :  { %v504_v46 = vpop.f32.mrb[2].mxu0  ;;  %v787_v47 = vpop.f32.mrb[2].mxu1 }
 0x357   :  { %v4604_v48 = vpop.f32.mrb[3].mxu0  ;;  %v4648_v49 = vpop.f32.mrb[3].mxu1  ;;  %v788_v6 = vadd.f32 %v4317_v3, %v787_v47  ;;  %v505_v15 = vadd.f32 %v4317_v3, %v504_v46 }
 0x358   :  { %v4340_v49 = vld [vmem:[#allocation16] ss:$0 sm:$0xff] }
 0x359   :  { %v2144_v16 = vmul.f32 0.35355338, %v788_v6  ;;  %v2140_v21 = vmul.f32 0.35355338, %v505_v15 }
 0x35e   :  { %v574_v50 = vpop.f32.mrb[4].mxu0  ;;  %v927_v51 = vpop.f32.mrb[4].mxu1 }
 0x35f   :  { %v4615_v19 = vpop.f32.mrb[5].mxu0  ;;  %v4670_v53 = vpop.f32.mrb[5].mxu1  ;;  %v575_v22 = vadd.f32 %v4318_v17, %v574_v50  ;;  %v928_v23 = vadd.f32 %v4319_v57, %v927_v51 }
 0x361   :  { %v2141_v31 = vmul.f32 0.35355338, %v575_v22  ;;  %v2146_v32 = vmul.f32 0.35355338, %v928_v23 }
 0x366   :  { %v6199_v54 = vpop.f32.mrb[6].mxu0  ;;  %v1111_v55 = vpop.f32.mrb[6].mxu1 }
 0x367   :  { %v4637_v56 = vpop.f32.mrb[7].mxu0  ;;  %v4692_v52 = vpop.f32.mrb[7].mxu1  ;;  %v1112_v18 = vadd.f32 %v4329_v7, %v1111_v55  ;;  %v718_v34 = vadd.f32 %v4316_v2, %v6199_v54 }
 0x369   :  { %v2143_v41 = vmul.f32 0.35355338, %v718_v34 }
 0x36e   :  { %v6201_v60 = vpop.f32.mrb[8].mxu0  ;;  %v1251_v61 = vpop.f32.mrb[8].mxu1 }
 0x36f   :  { %v1252_v62 = vadd.f32 %v4331_v58, %v1251_v61  ;;  %v4659_v63 = vpop.f32.mrb[9].mxu0  ;;  %v4714_v0 = vpop.f32.mrb[9].mxu1  ;;  %v858_v42 = vadd.f32 %v4318_v17, %v6201_v60 }
 0x371   :  { %4863 = vmatpush3.xpose.msk.msra.mxu1 %vm2147_vm2, %v1252_v62  ;;  %v2145_v48 = vmul.f32 0.35355338, %v858_v42 }
 0x372   :  { %4872 = vmatprep.subr.mxu1 %v5707_v27 }
 0x374   :  { %4865 = vmatmul.mubr.msk.f32.vlgmr.msra.gmra.mrb[22].mxu1 %vm2147_vm2, %v2142_v1 }
 0x375   :  { %4874 = vmatprep.mubr.msk.f32.mxu1 %vm5706_vm1, %v5707_v27 }
 0x376   :  { %v1041_v8 = vpop.f32.mrb[10].mxu0  ;;  %v1391_v9 = vpop.f32.mrb[10].mxu1 }
 0x377   :  { %v1042_v10 = vadd.f32 %v4328_v4, %v1041_v8  ;;  %v1392_v11 = vadd.f32 %v4329_v7, %v1391_v9  ;;  %v4681_v12 = vpop.f32.mrb[11].mxu0  ;;  %v4736_v13 = vpop.f32.mrb[11].mxu1 }
 0x379   :  { %4848 = vmatpush3.xpose.msk.msra.mxu0 %vm2147_vm2, %v1042_v10  ;;  %4873 = vmatpush3.xpose.msk.msra.mxu1 %vm2147_vm2, %v1392_v11 }
 0x37a   :  { %4852 = vmatprep.subr.mxu0 %v5707_v27  ;;  %4882 = vmatprep.subr.mxu1 %v5707_v27 }
 0x37c   :  { %4850 = vmatmul.mubr.msk.f32.vlgmr.msra.gmra.mrb[26].mxu0 %vm2147_vm2, %v2139_v14  ;;  %4875 = vmatmul.mubr.msk.f32.vlgmr.msra.gmra.mrb[24].mxu1 %vm2147_vm2, %v2144_v16 }
 0x37d   :  { %4853 = vmatpush3.xpose.msk.msra.mxu0 %vm2147_vm2, %v1112_v18  ;;  %4854 = vmatprep.mubr.msk.f32.mxu0 %vm5706_vm1, %v5707_v27 }
 0x37e   :  { %v1181_v24 = vpop.f32.mrb[12].mxu0  ;;  %v1531_v25 = vpop.f32.mrb[12].mxu1  ;;  %4857 = vmatprep.subr.mxu0 %v5707_v27  ;;  %4884 = vmatprep.mubr.msk.f32.mxu1 %vm5706_vm1, %v5707_v27 }
 0x37f   :  { %v1182_v26 = vadd.f32 %v4330_v20, %v1181_v24  ;;  %v1532_v28 = vadd.f32 %v4331_v58, %v1531_v25  ;;  %v4703_v29 = vpop.f32.mrb[13].mxu0  ;;  %v4758_v30 = vpop.f32.mrb[13].mxu1 }
 0x380   :  { %4855 = vmatmul.mubr.msk.f32.vlgmr.msra.gmra.mrb[28].mxu0 %vm2147_vm2, %v2140_v21 }
 0x381   :  { %4858 = vmatpush3.xpose.msk.msra.mxu0 %vm2147_vm2, %v1182_v26  ;;  %4883 = vmatpush3.xpose.msk.msra.mxu1 %vm2147_vm2, %v1532_v28 }
 0x382   :  { %4859 = vmatprep.mubr.msk.f32.mxu0 %vm5706_vm1, %v5707_v27  ;;  %4867 = vmatprep.subr.mxu0 %v5707_v27 }
 0x383   :  { %4892 = vmatprep.subr.mxu1 %v5707_v27 }
 0x384   :  { %4860 = vmatmul.mubr.msk.f32.vlgmr.msra.gmra.mrb[30].mxu0 %vm2147_vm2, %v2141_v31  ;;  %4885 = vmatmul.mubr.msk.f32.vlgmr.msra.gmra.mrb[26].mxu1 %vm2147_vm2, %v2146_v32 }
 0x385   :  { %4869 = vmatprep.mubr.msk.f32.mxu0 %vm5706_vm1, %v5707_v27  ;;  %4894 = vmatprep.mubr.msk.f32.mxu1 %vm5706_vm1, %v5707_v27 }
 0x386   :  { %v1321_v35 = vpop.f32.mrb[14].mxu0  ;;  %v1715_v36 = vpop.f32.mrb[14].mxu1 }
 0x387   :  { %v1322_v37 = vadd.f32 %v4328_v4, %v1321_v35  ;;  %v1716_v38 = vadd.f32 %v4341_v33, %v1715_v36  ;;  %v4725_v39 = vpop.f32.mrb[15].mxu0  ;;  %v4780_v40 = vpop.f32.mrb[15].mxu1 }
 0x389   :  { %4868 = vmatpush3.xpose.msk.msra.mxu0 %vm2147_vm2, %v1322_v37  ;;  %4893 = vmatpush3.msra.mxu1 %v1716_v38 }
 0x38a   :  { %4877 = vmatprep.subr.mxu0 %v5707_v27  ;;  %4902 = vmatprep.subr.mxu1 %v5707_v27 }
 0x38c   :  { %4870 = vmatmul.mubr.msk.f32.vlgmr.msra.gmra.mrb[32].mxu0 %vm2147_vm2, %v2143_v41 }
 0x38d   :  { %4879 = vmatprep.mubr.msk.f32.mxu0 %vm5706_vm1, %v5707_v27 }
 0x38e   :  { %v1461_v43 = vpop.f32.mrb[16].mxu0  ;;  %v6241_v44 = vpop.f32.mrb[16].mxu1 }
 0x38f   :  { %v1462_v45 = vadd.f32 %v4330_v20, %v1461_v43  ;;  %v4747_v46 = vpop.f32.mrb[17].mxu0  ;;  %v4802_v47 = vpop.f32.mrb[17].mxu1 }
 0x391   :  { %4878 = vmatpush3.xpose.msk.msra.mxu0 %vm2147_vm2, %v1462_v45 }
 0x392   :  { %4887 = vmatprep.subr.mxu0 %v5707_v27 }
 0x394   :  { %4880 = vmatmul.mubr.msk.f32.vlgmr.msra.gmra.mrb[34].mxu0 %vm2147_vm2, %v2145_v48 }
 0x395   :  { %4889 = vmatprep.mubr.msk.f32.mxu0 %vm5706_vm1, %v5707_v27 }
 0x396   :  { %v1645_v50 = vpop.f32.mrb[18].mxu0  ;;  %v1995_v51 = vpop.f32.mrb[18].mxu1 }
 0x397   :  { %v1646_v19 = vadd.f32 %v4340_v49, %v1645_v50  ;;  %v6248_v53 = vadd.f32 %v4341_v33, %v1995_v51  ;;  %v4769_v54 = vpop.f32.mrb[19].mxu0  ;;  %v4824_v55 = vpop.f32.mrb[19].mxu1 }
 0x399   :  { %4888 = vmatpush3.msra.mxu0 %v1646_v19 }
 0x39a   :  { %4897 = vmatprep.subr.mxu0 %v5707_v27 }
 0x39e   :  { %v6251_v56 = vpop.f32.mrb[20].mxu0  ;;  %v6253_v52 = vpop.f32.mrb[20].mxu1 }
 0x39f   :  { %v4791_v57 = vpop.f32.mrb[21].mxu0  ;;  %v4846_v58 = vpop.f32.mrb[21].mxu1 }
 0x3a6   :  { %v1925_v59 = vpop.f32.mrb[22].mxu0 }
 0x3a7   :  { %v6255_v60 = vadd.f32 %v4340_v49, %v1925_v59  ;;  %v4813_v61 = vpop.f32.mrb[23].mxu0 }
 0x3ae   :  { %v6257_v62 = vpop.f32.mrb[24].mxu0 }
 0x3af   :  { %v4835_v63 = vpop.f32.mrb[25].mxu0 }
 0x447   :  { %v2448_v0 = vpop.f32.mrb[22].mxu1 }
 0x448   :  { %v4866_v1 = vpop.f32.mrb[23].mxu1  ;;  %v2765_v14 = vsel %vm2147_vm2, %v2448_v0, -inf }
 0x44f   :  { %v2220_v2 = vpop.f32.mrb[26].mxu0  ;;  %v2600_v3 = vpop.f32.mrb[24].mxu1 }
 0x450   :  { %v4851_v4 = vpop.f32.mrb[27].mxu0  ;;  %v4876_v5 = vpop.f32.mrb[25].mxu1  ;;  %v2756_v6 = vsel %vm2147_vm2, %v2220_v2, -inf  ;;  %v2771_v16 = vsel %vm2147_vm2, %v2600_v3, -inf }
 0x451   :  { %2757 = vmax.xlane.f32.xlu0 %v2756_v6 }
 0x453   :  { %v2296_v7 = vpop.f32.mrb[28].mxu0 }
 0x454   :  { %v4856_v8 = vpop.f32.mrb[29].mxu0  ;;  %v2759_v9 = vsel %vm2147_vm2, %v2296_v7, -inf }
 0x455   :  { %2760 = vmax.xlane.f32.xlu1 %v2759_v9 }
 0x457   :  { %v2372_v10 = vpop.f32.mrb[30].mxu0  ;;  %v2752_v11 = vpop.f32.mrb[26].mxu1 }
 0x458   :  { %v4861_v12 = vpop.f32.mrb[31].mxu0  ;;  %v4886_v13 = vpop.f32.mrb[27].mxu1  ;;  %v2762_v15 = vsel %vm2147_vm2, %v2372_v10, -inf  ;;  %v2777_v20 = vsel %vm2147_vm2, %v2752_v11, -inf }
 0x459   :  { %2766 = vmax.xlane.f32.xlu1 %v2765_v14  ;;  %2763 = vmax.xlane.f32.xlu0 %v2762_v15 }
 0x45d   :  { %2772 = vmax.xlane.f32.xlu1 %v2771_v16  ;;  %v4343_v16 = vld [vmem:[#allocation16 + $0x3] ss:$0 sm:$0xff] }
 0x45f   :  { %v2524_v17 = vpop.f32.mrb[32].mxu0 }
 0x460   :  { %v4871_v18 = vpop.f32.mrb[33].mxu0  ;;  %v2768_v21 = vsel %vm2147_vm2, %v2524_v17, -inf }
 0x461   :  { %2778 = vmax.xlane.f32.xlu1 %v2777_v20  ;;  %2769 = vmax.xlane.f32.xlu0 %v2768_v21  ;;  %v1856_v21 = vadd.f32 %v4343_v16, %v6241_v44 }
 0x467   :  { %v2676_v22 = vpop.f32.mrb[34].mxu0 }
 0x468   :  { %v4881_v23 = vpop.f32.mrb[35].mxu0  ;;  %v2774_v24 = vsel %vm2147_vm2, %v2676_v22, -inf }
 0x469   :  { %2775 = vmax.xlane.f32.xlu0 %v2774_v24 }
 0x4de   :  { %v2758_v25 = vpop.xlane.xlu0 %2757 }
 0x4df   :  { %v2780_v26 = vsub.f32 %v2220_v2, %v2758_v25 }
 0x4e1   :  { %v2788_v28 = vmul.f32 1.442695, %v2780_v26 }
 0x4e2   :  { %v2761_v29 = vpop.xlane.xlu1 %2760 }
 0x4e3   :  { %5226 = vpow2.f32 %v2788_v28  ;;  %v2781_v30 = vsub.f32 %v2296_v7, %v2761_v29  ;;  %v2136_v29 = vadd.f32 %v4343_v16, %v6253_v52 }
 0x4e5   :  { %v2790_v31 = vmul.f32 1.442695, %v2781_v30 }
 0x4e6   :  { %v2767_v32 = vpop.xlane.xlu1 %2766  ;;  %v2764_v33 = vpop.xlane.xlu0 %2763 }
 0x4e7   :  { %5228 = vpow2.f32 %v2790_v31  ;;  %v2783_v34 = vsub.f32 %v2448_v0, %v2767_v32  ;;  %v2782_v35 = vsub.f32 %v2372_v10, %v2764_v33 }
 0x4e9   :  { %v2794_v36 = vmul.f32 1.442695, %v2783_v34  ;;  %v2792_v37 = vmul.f32 1.442695, %v2782_v35  ;;  %v3429_v34 = vld [vmem:[#allocation17 + $0x8] sm:$0xff]  ;;  %v3430_v35 = vld [vmem:[#allocation17 + $0x10] sm:$0xff] }
 0x4ea   :  { %v2773_v38 = vpop.xlane.xlu1 %2772 }
 0x4eb   :  { %5230 = vpow2.f32 %v2794_v36  ;;  %v2785_v39 = vsub.f32 %v2600_v3, %v2773_v38  ;;  %v3431_v38 = vld [vmem:[#allocation17 + $0x18] sm:$0xff] }
 0x4ec   :  { %5232 = vpow2.f32 %v2792_v37 }
 0x4ed   :  { %v5227_v40 = vpop.eup %5226  ;;  %v2798_v41 = vmul.f32 1.442695, %v2785_v39 }
 0x4ee   :  { %v2779_v42 = vpop.xlane.xlu1 %2778  ;;  %v2770_v43 = vpop.xlane.xlu0 %2769  ;;  %v2804_v45 = vsel %vm2147_vm2, %v5227_v40, 0.0 }
 0x4ef   :  { %5234 = vpow2.f32 %v2798_v41  ;;  %v2787_v46 = vsub.f32 %v2752_v11, %v2779_v42  ;;  %v2784_v47 = vsub.f32 %v2524_v17, %v2770_v43  ;;  %2805 = vadd.xlane.f32.xlu0 %v2804_v45  ;;  %v4342_v11 = vld [vmem:[#allocation16 + $0x2] ss:$0 sm:$0xff] }
 0x4f0   :  { %v1786_v15 = vadd.f32 %v4342_v11, %v6251_v56  ;;  %v2066_v31 = vadd.f32 %v4342_v11, %v6257_v62  ;;  %v3428_v62 = vld [vmem:[#allocation17] sm:$0xff] }
 0x4f1   :  { %v5229_v48 = vpop.eup %5228  ;;  %v2802_v49 = vmul.f32 1.442695, %v2787_v46  ;;  %v2796_v50 = vmul.f32 1.442695, %v2784_v47 }
 0x4f2   :  { %v2807_v51 = vsel %vm2147_vm2, %v5229_v48, 0.0 }
 0x4f3   :  { %5236 = vpow2.f32 %v2802_v49  ;;  %2808 = vadd.xlane.f32.xlu1 %v2807_v51 }
 0x4f4   :  { %5238 = vpow2.f32 %v2796_v50 }
 0x4f5   :  { %v5231_v19 = vpop.eup %5230 }
 0x4f6   :  { %v5233_v54 = vpop.eup %5232  ;;  %v2776_v55 = vpop.xlane.xlu0 %2775  ;;  %v2813_v57 = vsel %vm2147_vm2, %v5231_v19, 0.0 }
 0x4f7   :  { %v2786_v58 = vsub.f32 %v2676_v22, %v2776_v55  ;;  %2814 = vadd.xlane.f32.xlu1 %v2813_v57  ;;  %v2810_v59 = vsel %vm2147_vm2, %v5233_v54, 0.0 }
 0x4f8   :  { %2811 = vadd.xlane.f32.xlu0 %v2810_v59 }
 0x4f9   :  { %v5235_v61 = vpop.eup %5234  ;;  %v2800_v63 = vmul.f32 1.442695, %v2786_v58 }
 0x4fa   :  { %v2819_v0 = vsel %vm2147_vm2, %v5235_v61, 0.0 }
 0x4fb   :  { %5240 = vpow2.f32 %v2800_v63  ;;  %2820 = vadd.xlane.f32.xlu1 %v2819_v0 }
 0x4fd   :  { %v5237_v1 = vpop.eup %5236 }
 0x4fe   :  { %v5239_v2 = vpop.eup %5238  ;;  %v2825_v3 = vsel %vm2147_vm2, %v5237_v1, 0.0 }
 0x4ff   :  { %2826 = vadd.xlane.f32.xlu1 %v2825_v3  ;;  %v2816_v4 = vsel %vm2147_vm2, %v5239_v2, 0.0 }
 0x500   :  { %2817 = vadd.xlane.f32.xlu0 %v2816_v4  ;;  %v4384_v4 = vld [vmem:[#allocation19] ss:$0 sm:$0xff] }
 0x505   :  { %v6274_v5 = vpop.eup %5240 }
 0x506   :  { %v2822_v6 = vsel %vm2147_vm2, %v6274_v5, 0.0 }
 0x507   :  { %2823 = vadd.xlane.f32.xlu0 %v2822_v6 }
 0x57c   :  { %v2806_v7 = vpop.xlane.xlu0 %2805 }
 0x57d   :  { %5242 = vrcp.f32 %v2806_v7 }
 0x580   :  { %v2809_v8 = vpop.xlane.xlu1 %2808 }
 0x581   :  { %5244 = vrcp.f32 %v2809_v8 }
 0x584   :  { %v2815_v9 = vpop.xlane.xlu1 %2814 }
 0x585   :  { %5246 = vrcp.f32 %v2815_v9  ;;  %v2812_v10 = vpop.xlane.xlu0 %2811 }
 0x586   :  { %5248 = vrcp.f32 %v2812_v10 }
 0x587   :  { %v5243_v12 = vpop.eup %5242 }
 0x588   :  { %v2836_v13 = vmul.f32 %v5243_v12, %v5227_v40  ;;  %v2821_v14 = vpop.xlane.xlu1 %2820 }
 0x589   :  { %5250 = vrcp.f32 %v2821_v14 }
 0x58a   :  { %4890 = vmatmul.mubr.msk.f32.vlgmr.msra.gmra.mrb[36].mxu0 %vm2147_vm2, %v2836_v13 }
 0x58b   :  { %v5245_v17 = vpop.eup %5244  ;;  %4898 = vmatpush3.msra.mxu0 %v1786_v15  ;;  %4899 = vmatprep.mubr.msk.f32.mxu0 %vm5706_vm1, %v5707_v27 }
 0x58c   :  { %v2837_v18 = vmul.f32 %v5245_v17, %v5229_v48  ;;  %v2827_v20 = vpop.xlane.xlu1 %2826  ;;  %4907 = vmatprep.subr.mxu0 %v5707_v27 }
 0x58d   :  { %5252 = vrcp.f32 %v2827_v20  ;;  %v2818_v22 = vpop.xlane.xlu0 %2817 }
 0x58e   :  { %5254 = vrcp.f32 %v2818_v22  ;;  %4895 = vmatmul.mubr.msk.f32.vlgmr.msra.gmra.mrb[28].mxu1 %vm2147_vm2, %v2837_v18  ;;  %v5267_v22 = vld [vmem:[#allocation2 + $0x8] sm:$0xff] }
 0x58f   :  { %v5247_v56 = vpop.eup %5246  ;;  %4903 = vmatpush3.msra.mxu1 %v1856_v21  ;;  %4904 = vmatprep.mubr.msk.f32.mxu1 %vm5706_vm1, %v5707_v27 }
 0x590   :  { %v5249_v23 = vpop.eup %5248  ;;  %v2839_v24 = vmul.f32 %v5247_v56, %v5231_v19  ;;  %4912 = vmatprep.subr.mxu1 %v5707_v27 }
 0x591   :  { %v2838_v25 = vmul.f32 %v5249_v23, %v5233_v54 }
 0x592   :  { %4905 = vmatmul.mubr.msk.f32.vlgmr.msra.gmra.mrb[30].mxu1 %vm2147_vm2, %v2839_v24 }
 0x593   :  { %v5251_v26 = vpop.eup %5250  ;;  %4900 = vmatmul.mubr.msk.f32.vlgmr.msra.gmra.mrb[38].mxu0 %vm2147_vm2, %v2838_v25  ;;  %4913 = vmatpush3.msra.mxu1 %v6248_v53 }
 0x594   :  { %v2841_v44 = vmul.f32 %v5251_v26, %v5235_v61  ;;  %4908 = vmatpush3.msra.mxu0 %v6255_v60  ;;  %v2824_v28 = vpop.xlane.xlu0 %2823  ;;  %4914 = vmatprep.mubr.msk.f32.mxu1 %vm5706_vm1, %v5707_v27 }
 0x595   :  { %5256 = vrcp.f32 %v2824_v28  ;;  %4922 = vmatprep.subr.mxu1 %v5707_v27  ;;  %4909 = vmatprep.mubr.msk.f32.mxu0 %vm5706_vm1, %v5707_v27 }
 0x596   :  { %4915 = vmatmul.mubr.msk.f32.vlgmr.msra.gmra.mrb[32].mxu1 %vm2147_vm2, %v2841_v44  ;;  %4917 = vmatprep.subr.mxu0 %v5707_v27 }
 0x597   :  { %v5253_v53 = vpop.eup %5252  ;;  %4923 = vmatpush3.msra.mxu1 %v2136_v29  ;;  %4924 = vmatprep.mubr.msk.f32.mxu1 %vm5706_vm1, %v5707_v27 }
 0x598   :  { %v5255_v60 = vpop.eup %5254  ;;  %v2843_v30 = vmul.f32 %v5253_v53, %v5237_v1  ;;  %4932 = vmatprep.subr.mxu1 %v5707_v27 }
 0x599   :  { %v2840_v52 = vmul.f32 %v5255_v60, %v5239_v2 }
 0x59a   :  { %4925 = vmatmul.mubr.msk.f32.vlgmr.msra.gmra.mrb[34].mxu1 %vm2147_vm2, %v2843_v30 }
 0x59b   :  { %4910 = vmatmul.mubr.msk.f32.vlgmr.msra.gmra.mrb[40].mxu0 %vm2147_vm2, %v2840_v52  ;;  %4934 = vmatprep.mubr.msk.f32.mxu1 %vm5706_vm1, %v5707_v27 }
 0x59c   :  { %4918 = vmatpush3.msra.mxu0 %v2066_v31  ;;  %4919 = vmatprep.mubr.msk.f32.mxu0 %vm5706_vm1, %v5707_v27  ;;  %v4077_v31 = vld [vmem:[#allocation23] sm:$0xff] }
 0x59d   :  { %4927 = vmatprep.subr.mxu0 %v5707_v27  ;;  %4933 = vmatpush3.msra.mxu1 %v3429_v34 }
 0x59e   :  { %4942 = vmatprep.subr.mxu1 %v5707_v27 }
 0x59f   :  { %v5257_v32 = vpop.eup %5256 }
 0x5a0   :  { %v2842_v33 = vmul.f32 %v5257_v32, %v6274_v5  ;;  %v4078_v32 = vld [vmem:[#allocation23 + $0x8] sm:$0xff] }
 0x5a2   :  { %4920 = vmatmul.mubr.msk.f32.vlgmr.msra.gmra.mrb[42].mxu0 %vm2147_vm2, %v2842_v33  ;;  %v5157_v33 = vpack.c.bf16 %v4078_v32, %v4077_v31 }
 0x5a3   :  { %4929 = vmatprep.mubr.msk.f32.mxu0 %vm5706_vm1, %v5707_v27  ;;  %4928 = vmatpush3.msra.mxu0 %v3428_v62 }
 0x5a4   :  { %4937 = vmatprep.subr.mxu0 %v5707_v27 }
 0x65d   :  { %v2913_v36 = vpop.f32.mrb[36].mxu0 }
 0x65e   :  { %v4891_v37 = vpop.f32.mrb[37].mxu0  ;;  %4930 = vmatmul.mubr.msk.f32.vlgmr.msra.gmra.mrb[44].mxu0 %vm2147_vm2, %v2913_v36 }
 0x65f   :  { %4938 = vmatpush3.msra.mxu0 %v3430_v35  ;;  %4939 = vmatprep.mubr.msk.f32.mxu0 %vm5706_vm1, %v5707_v27 }
 0x660   :  { %4947 = vmatprep.subr.mxu0 %v5707_v27 }
 0x661   :  { %v2986_v39 = vpop.f32.mrb[28].mxu1 }
 0x662   :  { %v4896_v40 = vpop.f32.mrb[29].mxu1  ;;  %4935 = vmatmul.mubr.msk.f32.vlgmr.msra.gmra.mrb[36].mxu1 %vm2147_vm2, %v2986_v39 }
 0x663   :  { %4943 = vmatpush3.msra.mxu1 %v3431_v38  ;;  %4944 = vmatprep.mubr.msk.f32.mxu1 %vm5706_vm1, %v5707_v27 }
 0x664   :  { %4952 = vmatprep.subr.mxu1 %v5707_v27 }
 0x665   :  { %v3132_v41 = vpop.f32.mrb[30].mxu1 }
 0x666   :  { %v3059_v42 = vpop.f32.mrb[38].mxu0  ;;  %v4906_v43 = vpop.f32.mrb[31].mxu1  ;;  %4945 = vmatmul.mubr.msk.f32.vlgmr.msra.gmra.mrb[38].mxu1 %vm2147_vm2, %v3132_v41  ;;  %v4385_v41 = vld [vmem:[#allocation20] ss:$0 sm:$0xff] }
 0x667   :  { %v4901_v45 = vpop.f32.mrb[39].mxu0  ;;  %4940 = vmatmul.mubr.msk.f32.vlgmr.msra.gmra.mrb[46].mxu0 %vm2147_vm2, %v3059_v42  ;;  %4953 = vmatpush3.msra.mxu1 %v3429_v34  ;;  %v4080_v34 = vld [vmem:[#allocation23 + $0x18] sm:$0xff] }
 0x668   :  { %4954 = vmatprep.mubr.msk.f32.mxu1 %vm5706_vm1, %v5707_v27  ;;  %4962 = vmatprep.subr.mxu1 %v5707_v27  ;;  %v4386_v45 = vld [vmem:[#allocation22] ss:$0 sm:$0xff] }
 0x669   :  { %v3278_v46 = vpop.f32.mrb[32].mxu1  ;;  %4948 = vmatpush3.msra.mxu0 %v3428_v62  ;;  %4949 = vmatprep.mubr.msk.f32.mxu0 %vm5706_vm1, %v5707_v27  ;;  %v4079_v62 = vld [vmem:[#allocation23 + $0x10] sm:$0xff] }
 0x66a   :  { %v4916_v47 = vpop.f32.mrb[33].mxu1  ;;  %4955 = vmatmul.mubr.msk.f32.vlgmr.msra.gmra.mrb[40].mxu1 %vm2147_vm2, %v3278_v46  ;;  %4957 = vmatprep.subr.mxu0 %v5707_v27 }
 0x66b   :  { %4963 = vmatpush3.msra.mxu1 %v3431_v38  ;;  %4964 = vmatprep.mubr.msk.f32.mxu1 %vm5706_vm1, %v5707_v27 }
 0x66d   :  { %v3424_v48 = vpop.f32.mrb[34].mxu1 }
 0x66e   :  { %v3205_v49 = vpop.f32.mrb[40].mxu0  ;;  %v4926_v50 = vpop.f32.mrb[35].mxu1  ;;  %4965 = vmatmul.mubr.msk.f32.vlgmr.msra.gmra.mrb[42].mxu1 %vm2147_vm2, %v3424_v48 }
 0x66f   :  { %v4911_v51 = vpop.f32.mrb[41].mxu0  ;;  %4950 = vmatmul.mubr.msk.f32.vlgmr.msra.gmra.mrb[48].mxu0 %vm2147_vm2, %v3205_v49 }
 0x670   :  { %4958 = vmatpush3.msra.mxu0 %v3430_v35  ;;  %4959 = vmatprep.mubr.msk.f32.mxu0 %vm5706_vm1, %v5707_v27  ;;  %v5266_v27 = vld [vmem:[#allocation2] sm:$0xff]  ;;  %v5161_v35 = vpack.c.bf16 %v4080_v34, %v4079_v62 }
 0x671   :  { %5158 = vmatprep.subr.bf16.mxu0 %v5157_v33 }
 0x675   :  { %v3351_v19 = vpop.f32.mrb[42].mxu0 }
 0x676   :  { %v4921_v54 = vpop.f32.mrb[43].mxu0  ;;  %4960 = vmatmul.mubr.msk.f32.vlgmr.msra.gmra.mrb[50].mxu0 %vm2147_vm2, %v3351_v19 }
 0x677   :  { %5160 = vmatpush3.bf16.msra.mxu0 %v5157_v33  ;;  %v4187_v54 = vld [vmem:[#allocation26] sm:$0xff] }
 0x678   :  { %5162 = vmatprep.subr.bf16.mxu0 %v5161_v35 }
 0x67b   :  { %5164 = vmatpush3.bf16.msra.mxu0 %v5161_v35 }
 0x731   :  { %v3501_v55 = vpop.f32.mrb[44].mxu0 }
 0x732   :  { %v4931_v57 = vpop.f32.mrb[45].mxu0 }
 0x735   :  { %v3574_v58 = vpop.f32.mrb[36].mxu1 }
 0x736   :  { %v4016_v59 = vadd.f32 %v3574_v58, %v3501_v55  ;;  %v4936_v61 = vpop.f32.mrb[37].mxu1  ;;  %v4188_v55 = vld [vmem:[#allocation26 + $0x8] sm:$0xff]  ;;  %v4189_v58 = vld [vmem:[#allocation26 + $0x10] sm:$0xff] }
 0x737   :  { %v5165_v57 = vpack.c.bf16 %v4188_v55, %v4187_v54 }
 0x739   :  { %v3720_v63 = vpop.f32.mrb[38].mxu1  ;;  %5166 = vmatprep.subr.bf16.mxu1 %v5165_v57 }
 0x73a   :  { %v3647_v0 = vpop.f32.mrb[46].mxu0  ;;  %v4946_v1 = vpop.f32.mrb[39].mxu1  ;;  %5168 = vmatpush3.bf16.msra.mxu1 %v5165_v57 }
 0x73b   :  { %v4018_v2 = vadd.f32 %v4016_v59, %v3647_v0  ;;  %v4941_v3 = vpop.f32.mrb[47].mxu0  ;;  %v4190_v59 = vld [vmem:[#allocation26 + $0x18] sm:$0xff]  ;;  %v4192_v0 = vld [vmem:[#allocation26 + $0x28] sm:$0xff] }
 0x73c   :  { %v5169_v61 = vpack.c.bf16 %v4190_v59, %v4189_v58  ;;  %v4194_v3 = vld [vmem:[#allocation26 + $0x38] sm:$0xff] }
 0x73d   :  { %v4020_v5 = vadd.f32 %v4018_v2, %v3720_v63  ;;  %v3866_v6 = vpop.f32.mrb[40].mxu1  ;;  %v4191_v63 = vld [vmem:[#allocation26 + $0x20] sm:$0xff]  ;;  %v4193_v2 = vld [vmem:[#allocation26 + $0x30] sm:$0xff] }
 0x73e   :  { %v4956_v7 = vpop.f32.mrb[41].mxu1  ;;  %5170 = vmatprep.subr.bf16.mxu1 %v5169_v61  ;;  %v5173_v1 = vpack.c.bf16 %v4192_v0, %v4191_v63 }
 0x73f   :  { %v4029_v8 = vadd.f32 %v4384_v4, %v4020_v5  ;;  %5172 = vmatpush3.bf16.msra.mxu1 %v5169_v61  ;;  %v4195_v5 = vld [vmem:[#allocation26 + $0x40] sm:$0xff]  ;;  %v4197_v7 = vld [vmem:[#allocation26 + $0x50] sm:$0xff] }
 0x740   :  { %5174 = vmatprep.subr.bf16.mxu1 %v5173_v1 }
 0x741   :  { %v6341_v9 = vadd.f32 %v5266_v27, %v4029_v8  ;;  %v4012_v10 = vpop.f32.mrb[42].mxu1  ;;  %v4198_v27 = vld [vmem:[#allocation26 + $0x58] sm:$0xff] }
 0x742   :  { %v3793_v11 = vpop.f32.mrb[48].mxu0  ;;  %v4966_v12 = vpop.f32.mrb[43].mxu1 }
 0x743   :  { %v4017_v13 = vadd.f32 %v3866_v6, %v3793_v11  ;;  %v4951_v14 = vpop.f32.mrb[49].mxu0  ;;  %v4033_v15 = vsel %vm275_vm0, %v6341_v9, 0.0  ;;  %5176 = vmatpush3.bf16.msra.mxu1 %v5173_v1  ;;  %v4196_v6 = vld [vmem:[#allocation26 + $0x48] sm:$0xff]  ;;  %v4199_v11 = vld [vmem:[#allocation26 + $0x60] sm:$0xff] }
 0x744   :  { %4034 = vadd.xlane.f32.xlu0 %v4033_v15  ;;  %v5181_v8 = vpack.c.bf16 %v4196_v6, %v4195_v5  ;;  %v4200_v12 = vld [vmem:[#allocation26 + $0x68] sm:$0xff]  ;;  %v4201_v14 = vld [vmem:[#allocation26 + $0x70] sm:$0xff]  ;;  %v4202_v15 = vld [vmem:[#allocation26 + $0x78] sm:$0xff] }
 0x749   :  { %v3939_v16 = vpop.f32.mrb[50].mxu0 }
 0x74a   :  { %v4019_v17 = vadd.f32 %v4017_v13, %v3939_v16  ;;  %v4961_v18 = vpop.f32.mrb[51].mxu0  ;;  %v5189_v13 = vpack.c.bf16 %v4200_v12, %v4199_v11  ;;  %v5193_v16 = vpack.c.bf16 %v4202_v15, %v4201_v14 }
 0x74c   :  { %v4021_v20 = vadd.f32 %v4019_v17, %v4012_v10  ;;  %v5185_v10 = vpack.c.bf16 %v4198_v27, %v4197_v7  ;;  %v4387_v17 = vld [vmem:[#allocation25] ss:$0 sm:$0xff] }
 0x74e   :  { %v4030_v21 = vadd.f32 %v4384_v4, %v4021_v20  ;;  %v5177_v4 = vpack.c.bf16 %v4194_v3, %v4193_v2 }
 0x750   :  { %v6345_v56 = vadd.f32 %v5267_v22, %v4030_v21  ;;  %5178 = vmatprep.subr.bf16.mxu1 %v5177_v4 }
 0x751   :  { %5180 = vmatpush3.bf16.msra.mxu1 %v5177_v4 }
 0x752   :  { %v4036_v23 = vsel %vm275_vm0, %v6345_v56, 0.0  ;;  %5182 = vmatprep.subr.bf16.mxu1 %v5181_v8 }
 0x753   :  { %4037 = vadd.xlane.f32.xlu1 %v4036_v23 }
 0x755   :  { %5184 = vmatpush3.bf16.msra.mxu1 %v5181_v8 }
 0x756   :  { %5186 = vmatprep.subr.bf16.mxu1 %v5185_v10 }
 0x759   :  { %5188 = vmatpush3.bf16.msra.mxu1 %v5185_v10 }
 0x75a   :  { %5190 = vmatprep.subr.bf16.mxu1 %v5189_v13 }
 0x75d   :  { %5192 = vmatpush3.bf16.msra.mxu1 %v5189_v13 }
 0x75e   :  { %5194 = vmatprep.subr.bf16.mxu1 %v5193_v16 }
 0x761   :  { %5196 = vmatpush3.bf16.msra.mxu1 %v5193_v16 }
 0x7d1   :  { %v4035_v24 = vpop.xlane.xlu0 %4034 }
 0x7d2   :  { %v4039_v25 = vmul.f32 0.03125, %v4035_v24 }
 0x7d4   :  { %v4041_v26 = vsub.f32 %v6341_v9, %v4039_v25 }
 0x7d6   :  { %v4043_v44 = vmul.f32 %v4041_v26, %v4041_v26 }
 0x7d8   :  { %v4045_v28 = vsel %vm275_vm0, %v4043_v44, 0.0 }
 0x7d9   :  { %4046 = vadd.xlane.f32.xlu0 %v4045_v28 }
 0x7e0   :  { %v4038_v29 = vpop.xlane.xlu1 %4037 }
 0x7e1   :  { %v4040_v53 = vmul.f32 0.03125, %v4038_v29 }
 0x7e3   :  { %v4042_v60 = vsub.f32 %v6345_v56, %v4040_v53 }
 0x7e5   :  { %v4044_v30 = vmul.f32 %v4042_v60, %v4042_v60 }
 0x7e7   :  { %v4048_v52 = vsel %vm275_vm0, %v4044_v30, 0.0 }
 0x7e8   :  { %4049 = vadd.xlane.f32.xlu1 %v4048_v52 }
 0x866   :  { %v4047_v36 = vpop.xlane.xlu0 %4046 }
 0x867   :  { %v4051_v37 = vmul.f32 0.03125, %v4047_v36 }
 0x869   :  { %v4053_v38 = vadd.f32 1e-06, %v4051_v37  ;;  %v4390_v37 = vld [vmem:[#allocation28] ss:$0 sm:$0xff] }
 0x86b   :  { %5258 = vrsqrt.f32 %v4053_v38 }
 0x875   :  { %v5259_v39 = vpop.eup %5258  ;;  %v4050_v40 = vpop.xlane.xlu1 %4049 }
 0x876   :  { %v4052_v42 = vmul.f32 0.03125, %v4050_v40  ;;  %v4057_v43 = vmul.f32 %v5259_v39, %v4041_v26 }
 0x878   :  { %v4054_v46 = vadd.f32 1e-06, %v4052_v42  ;;  %v4066_v47 = vmul.f32 %v4385_v41, %v4057_v43 }
 0x87a   :  { %5260 = vrsqrt.f32 %v4054_v46  ;;  %v4075_v48 = vadd.f32 %v4386_v45, %v4066_v47 }
 0x87c   :  { %4975 = vmatprep.mubr.msk.f32.mxu0 %vm275_vm0, %v4075_v48 }
 0x884   :  { %v5261_v49 = vpop.eup %5260 }
 0x885   :  { %v4058_v50 = vmul.f32 %v5261_v49, %v4042_v60 }
 0x887   :  { %v4067_v51 = vmul.f32 %v4385_v41, %v4058_v50 }
 0x889   :  { %v4076_v19 = vadd.f32 %v4386_v45, %v4067_v51 }
 0x88b   :  { %4976 = vmatmul.mubr.msk.f32.vlgmr.msra.gmra.mrb[52].mxu0 %vm275_vm0, %v4076_v19 }
 0x95e   :  { %v4977_v18 = vpop.f32.mrb[52].mxu0 }
 0x95f   :  { %v4166_v20 = vadd.f32 %v4977_v18, %v4387_v17  ;;  %v4160_v21 = vpop.f32.mrb[53].mxu0 }
 0x960   :  { %v4161_v22 = vadd.f32 %v4387_v17, %v4160_v21 }
 0x961   :  { %v4170_v23 = vmul.f32 %v4166_v20, %v4166_v20 }
 0x962   :  { %v4169_v24 = vmul.f32 %v4161_v22, %v4161_v22 }
 0x963   :  { %v4172_v25 = vmul.f32 %v4170_v23, %v4166_v20 }
 0x964   :  { %v4171_v26 = vmul.f32 %v4169_v24, %v4161_v22 }
 0x965   :  { %v4174_v44 = vmul.f32 0.044715, %v4172_v25 }
 0x966   :  { %v4173_v28 = vmul.f32 0.044715, %v4171_v26 }
 0x967   :  { %v4176_v29 = vadd.f32 %v4174_v44, %v4166_v20 }
 0x968   :  { %v4175_v53 = vadd.f32 %v4173_v28, %v4161_v22 }
 0x969   :  { %v4178_v60 = vmul.f32 0.7978846, %v4176_v29 }
 0x96a   :  { %v4177_v30 = vmul.f32 0.7978846, %v4175_v53 }
 0x96b   :  { %5262 = vtanh.f32 %v4178_v60 }
 0x96c   :  { %5264 = vtanh.f32 %v4177_v30 }
 0x975   :  { %v5263_v52 = vpop.eup %5262 }
 0x976   :  { %v5265_v31 = vpop.eup %5264  ;;  %v4182_v32 = vadd.f32 1.0, %v5263_v52 }
 0x977   :  { %v4181_v33 = vadd.f32 1.0, %v5265_v31 }
 0x978   :  { %v4184_v62 = vmul.f32 0.5, %v4182_v32 }
 0x979   :  { %v4183_v34 = vmul.f32 0.5, %v4181_v33 }
 0x97a   :  { %v4186_v36 = vmul.f32 %v4184_v62, %v4166_v20 }
 0x97b   :  { %v4185_v35 = vmul.f32 %v4183_v34, %v4161_v22 }
 0x97d   :  { %5010 = vmatprep.mubr.f32.mxu1 %v4185_v35 }
 0x97e   :  { %5011 = vmatmul.mubr.f32.vlgmr.msra.gmra.mrb[44].mxu1 %v4186_v36 }
 0xa51   :  { %v5012_v38 = vpop.f32.mrb[44].mxu1 }
 0xa52   :  { %v4282_v39 = vadd.f32 %v5012_v38, %v4390_v37  ;;  %v4276_v40 = vpop.f32.mrb[45].mxu1 }
 0xa53   :  { %v4277_v41 = vadd.f32 %v4390_v37, %v4276_v40 }
 0xa54   :  { %v4286_v42 = vadd.f32 %v4282_v39, %v6345_v56 }
 0xa55   :  { %v4285_v43 = vadd.f32 %v4277_v41, %v6341_v9 }
 0xa56   :  { %4288 = vst.msk [vmem:[#allocation29 + $0x8] sm:$0xff] %vm275_vm0, %v4286_v42 }
 0xa57   :  { %4287 = vst.msk [vmem:[#allocation29] sm:$0xff] %vm275_vm0, %v4285_v43 }
 0xa58   :  { %5653 = shalt.err (!%p5650_p0)
}
 0xa59   :  { %s5654_s26 = scalar_lea.hbm %s6391_s17, 256 }
 0xa5a   :  { %p5655_p1 = scmp.ne.s32.totalorder %s6391_s17, %s5654_s26  ;;  %p5658_p2 = scmp.lt.u32.totalorder %s5654_s26, %s6391_s17 }
 0xa5c   :  { %p5660_p3 = pnand %p5658_p2, %p5655_p1 }
 0xa5e   :  { %5663 = shalt.err (!%p5660_p3)
}
 0xa5f   :  { %4300 = dma.vmem_to_hbm [thread:$0]  %s4295_s9, 256, %s6391_s17, [#allocation4], %s5687_s28, %s5687_s28, %s5688_s21  }
 0xa60   :  { %5682 = dma.done.wait [#allocation4], 256  }
 0xa61   :  { %5683 = vsyncadd [#allocation4], 4294967040 }
 0xa62   :  { %4304 = vsyncpa [#allocation3], 1 }
 0xa63   :  { %4305 = vsyncpa [#allocation6], 1 }
 0xa64   :  { %4306 = vsyncpa [#allocation9], 1 }
 0xa65   :  { %4307 = vsyncpa [#allocation12], 1 }
 0xa66   :  { %4308 = vsyncpa [#allocation15], 1 }
 0xa67   :  { %4309 = vsyncpa [#allocation18], 1 }
 0xa68   :  { %4310 = vsyncpa [#allocation21], 1 }
 0xa69   :  { %4311 = vsyncpa [#allocation24], 1 }
 0xa6a   :  { %4312 = vsyncpa [#allocation27], 1 }
 0xa6b   :  { %4313 = vsyncpa [#allocation4], 1 }

</bundles_post_ra>
